<compile_context>
chip_gen: v6e
topology: v6e:2x2x1
jax: 0.10.0
libtpu: 0.0.40
codegen_flags: <defaults>
</compile_context>

<pallas_src>
import functools

import jax
import jax.numpy as jnp
from jax.experimental import pallas as pl
from jax.experimental.pallas import tpu as pltpu


# Per-step (in + out) VMEM working set for the blocked path.  Double-buffered
# this is ~32 MiB: inside v7x's 64 MiB physical VMEM with headroom, and a 2x
# raise over the old 8 MiB cap for v5e/v6e's 128 MiB VMEM.
_STEP_BUDGET = 16 * 1024 * 1024
_VMEM_LIMIT = 48 * 1024 * 1024
# Below this total (in + out) size a fused XLA slice beats any kernel launch.
_MIN_PALLAS_BYTES = 1 * 1024 * 1024
# Minimum contiguous DMA row (Wo * itemsize) for the strided-DMA path; below
# this the copy is descriptor-bound and the blocked VMEM path wins.
_MIN_DMA_ROW_BYTES = 512
# Max DMAs kept in flight by the strided-DMA kernel.
_MAX_INFLIGHT_DMAS = 8


def _crop_window(H, W, boundary):
    """Exact PyTorch slice semantics of Crop.forward (parity from boundary[0],
    -0 stops, out-of-range clamping).  Returns (y0, Ho, x0, Wo)."""
    by, bx = boundary
    if by % 2 == 0:                       # `even` decided by boundary[0] only
        ys, ye, _ = slice(by // 2, -(by // 2)).indices(H)
        xs, xe, _ = slice(bx // 2, -(bx // 2)).indices(W)
    else:
        ys, ye, _ = slice(None, -by).indices(H)
        xs, xe, _ = slice(None, -bx).indices(W)
    return ys, max(ye - ys, 0), xs, max(xe - xs, 0)


# ---------------------------------------------------------------------------
# Path 1: HBM -> HBM strided DMA (primary; skips the boundary bytes entirely).
# ---------------------------------------------------------------------------
def _crop_dma_kernel(x_hbm, o_hbm, sems, *, y0, x0, ho, wo, chunk, n_chunks,
                     g_total):
    # x_hbm: (G, H, W) in HBM; o_hbm: (G, ho, wo) in HBM.  Pure DMA kernel:
    # issue all chunk copies (kept in flight together), then wait.  Static
    # unroll; n_chunks <= _MAX_INFLIGHT_DMAS.
    copies = []
    for j in range(n_chunks):
        g0 = j * chunk
        gs = min(chunk, g_total - g0)
        cp = pltpu.make_async_copy(
            x_hbm.at[pl.ds(g0, gs), pl.ds(y0, ho), pl.ds(x0, wo)],
            o_hbm.at[pl.ds(g0, gs)],
            sems.at[j])
        cp.start()
        copies.append(cp)
    for cp in copies:
        cp.wait()


def _crop_dma(x_flat, y0, x0, ho, wo):
    G, H, W = x_flat.shape
    itemsize = x_flat.dtype.itemsize
    n_chunks = max(1, min(G, _MAX_INFLIGHT_DMAS))
    chunk = pl.cdiv(G, n_chunks)
    n_chunks = pl.cdiv(G, chunk)            # drop empty trailing chunks

    kernel = functools.partial(
        _crop_dma_kernel, y0=y0, x0=x0, ho=ho, wo=wo,
        chunk=chunk, n_chunks=n_chunks, g_total=G)

    return pl.pallas_call(
        kernel,
        out_shape=jax.ShapeDtypeStruct((G, ho, wo), x_flat.dtype),
        in_specs=[pl.BlockSpec(memory_space=pl.ANY)],
        out_specs=pl.BlockSpec(memory_space=pl.ANY),
        scratch_shapes=[pltpu.SemaphoreType.DMA((n_chunks,))],
        cost_estimate=pl.CostEstimate(
            flops=0, transcendentals=0,
            bytes_accessed=2 * G * ho * wo * itemsize),
    )(x_flat)


# ---------------------------------------------------------------------------
# Path 2: blocked VMEM copy (fallback for narrow rows / descriptor-bound DMA).
# ---------------------------------------------------------------------------
def _crop_block_kernel(x_ref, o_ref, *, y0, x0):
    # x_ref: (tg, H, W) VMEM tile; o_ref: (tg, ho, wo) VMEM tile.
    ho = o_ref.shape[1]
    wo = o_ref.shape[2]
    # TODO(synk): for Wo not a multiple of 128 a lane-dense flattened
    # (tg, ho*wo) out_spec would avoid masked vst.msk stores, but the
    # (ho, wo)->(ho*wo) relayout of a cropped tile is not guaranteed to lower
    # on every Mosaic generation, so row-shaped stores are kept here.
    o_ref[...] = x_ref[:, y0:y0 + ho, x0:x0 + wo]


def _crop_blocked(x_flat, y0, x0, ho, wo):
    G, H, W = x_flat.shape
    itemsize = x_flat.dtype.itemsize
    per_g = (H * W + ho * wo) * itemsize        # in + out bytes for one (n, c)

    if per_g > _STEP_BUDGET:
        # A single (H, W) slab already blows the per-step budget; let the
        # caller fall back to a plain XLA slice instead of VMEM-OOMing.
        # TODO(synk): H-tile the crop to keep this case on the Pallas path.
        return None

    # cdiv tiling: no divisor requirement (Pallas masks the ragged last
    # block; G is not a lane/sublane dim so no (8, 128) constraint applies).
    tg = max(1, min(G, _STEP_BUDGET // per_g))
    if G >= 2:
        # Guarantee >= 2 grid steps so both v7x TensorCores get work.
        tg = min(tg, (G + 1) // 2)
    n_blocks = pl.cdiv(G, tg)

    kernel = functools.partial(_crop_block_kernel, y0=y0, x0=x0)
    return pl.pallas_call(
        kernel,
        out_shape=jax.ShapeDtypeStruct((G, ho, wo), x_flat.dtype),
        grid=(n_blocks,),
        in_specs=[pl.BlockSpec((tg, H, W), lambda g: (g, 0, 0))],
        out_specs=pl.BlockSpec((tg, ho, wo), lambda g: (g, 0, 0)),
        compiler_params=pltpu.CompilerParams(
            dimension_semantics=("parallel",),
            vmem_limit_bytes=_VMEM_LIMIT),
        cost_estimate=pl.CostEstimate(
            flops=0, transcendentals=0, bytes_accessed=G * per_g),
    )(x_flat)


def crop_pallas(x, boundary=(0, 0)):
    """Equivalent of Crop(boundary).forward(x) for NCHW `x`."""
    N, C, H, W = x.shape
    boundary = tuple(boundary)

    if boundary == (0, 0):
        return x                                  # no crop: zero HBM traffic

    y0, ho, x0, wo = _crop_window(H, W, boundary)

    def xla_slice():
        return x[:, :, y0:y0 + ho, x0:x0 + wo]

    if ho == 0 or wo == 0:
        return xla_slice()                        # degenerate (empty) result

    itemsize = x.dtype.itemsize
    total_bytes = N * C * (H * W + ho * wo) * itemsize
    if total_bytes < _MIN_PALLAS_BYTES:
        return xla_slice()                        # tiny: fused XLA copy wins

    # Fold N into the channel axis: (N, C, H, W) -> (N*C, H, W) is a free,
    # contiguous reshape and yields fatter / more numerous grid steps.
    x_flat = x.reshape(N * C, H, W)

    if wo * itemsize >= _MIN_DMA_ROW_BYTES:
        try:
            out = _crop_dma(x_flat, y0, x0, ho, wo)
            return out.reshape(N, C, ho, wo)
        except Exception:
            # Strided last-dim HBM DMA failed to lower on this toolchain /
            # generation: fall back to the guaranteed blocked VMEM path.
            pass

    out = _crop_blocked(x_flat, y0, x0, ho, wo)
    if out is None:
        return xla_slice()
    return out.reshape(N, C, ho, wo)


def crop_ref(x, boundary=(0, 0)):
    """Pure-JAX reference mirroring the PyTorch forward exactly."""
    by, bx = boundary
    if (by, bx) == (0, 0):
        return x
    if by % 2 == 0:
        return x[:, :, by // 2:-(by // 2), bx // 2:-(bx // 2)]
    return x[:, :, :-by, :-bx]


if __name__ == "__main__":
    key = jax.random.PRNGKey(0)
    k1, k2, k3 = jax.random.split(key, 3)

    def check(x, boundary):
        out = jax.block_until_ready(crop_pallas(x, boundary))
        ref = crop_ref(x, boundary)
        return (out.shape == ref.shape and out.dtype == ref.dtype
                and bool(jnp.array_equal(out, ref)))

    ok = True

    # Module-spec shape: even / odd / mixed-parity / -0 / no-op boundaries
    # (tiny tensor -> fused XLA slice path).
    x_small = jax.random.normal(k1, (2, 4, 16, 16), dtype=jnp.float32)
    for boundary in [(4, 4), (3, 3), (4, 3), (3, 4), (0, 4), (0, 0)]:
        ok = ok and check(x_small, boundary)

    # Narrow rows (Wo * 4 B < 512 B) -> blocked VMEM Pallas path.
    x_mid = jax.random.normal(k2, (2, 32, 96, 112), dtype=jnp.float32)
    for boundary in [(4, 4), (3, 3)]:
        ok = ok and check(x_mid, boundary)

    # Wide rows (Wo * 4 B >= 512 B) -> HBM->HBM strided-DMA Pallas path.
    x_big = jax.random.normal(k3, (2, 8, 160, 192), dtype=jnp.float32)
    for boundary in [(8, 8), (5, 5)]:
        ok = ok and check(x_big, boundary)

    if ok:
        print("KERNEL_OK")
    else:
        print("KERNEL_MISMATCH")
</pallas_src>

<mosaic_0001>
module attributes {stable_mosaic.version = 11 : i64} {
  func.func @_crop_block_kernel(%arg0: i32, %arg1: memref<32x96x112xf32, #tpu.memory_space<vmem>>, %arg2: memref<32x92x108xf32, #tpu.memory_space<vmem>>) attributes {dimension_semantics = [#tpu.dimension_semantics<parallel>], iteration_bounds = array<i64: 2>, scalar_prefetch = 0 : i64, scratch_operands = 0 : i64, tpu.core_type = #tpu.core_type<tc>, window_params = [{transform_indices = @transform_0, window_bounds = array<i64: 32, 96, 112>}, {transform_indices = @transform_1, window_bounds = array<i64: 32, 92, 108>}]} {
    %c0 = arith.constant 0 : index
    %c2 = arith.constant 2 : index
    %c2_0 = arith.constant 2 : index
    %0 = vector.load %arg1[%c0, %c2, %c2_0] : memref<32x96x112xf32, #tpu.memory_space<vmem>>, vector<32x92x108xf32>
    %c0_1 = arith.constant 0 : index
    %c0_2 = arith.constant 0 : index
    %c0_3 = arith.constant 0 : index
    %1 = vector.load %arg2[%c0_1, %c0_2, %c0_3] : memref<32x92x108xf32, #tpu.memory_space<vmem>>, vector<32x92x108xf32>
    tpu.vector_store %arg2[%c0_1, %c0_2, %c0_3], %0 {strides = array<i32>} : memref<32x92x108xf32, #tpu.memory_space<vmem>>, vector<32x92x108xf32>,
    return
  }
  func.func @transform_0(%arg0: i32) -> (i32, i32, i32) {
    %c0_i32 = arith.constant 0 : i32
    %c0_i32_0 = arith.constant 0 : i32
    %c0_i32_1 = arith.constant 0 : i32
    return %arg0, %c0_i32, %c0_i32_0 : i32, i32, i32
  }
  func.func @transform_1(%arg0: i32) -> (i32, i32, i32) {
    %c0_i32 = arith.constant 0 : i32
    %c0_i32_0 = arith.constant 0 : i32
    %c0_i32_1 = arith.constant 0 : i32
    return %arg0, %c0_i32, %c0_i32_0 : i32, i32, i32
  }
}

</mosaic_0001>

<bundles_post_ra>
// kernel: tpu_custom_call.1
= control target key start
LH: loop header
LB: loop body
LE: loop exit
PB: predicated region body
PF: predicated region fallthrough
CT: control target
= control target key end

     0   :  { %6 = vsyncpa [#allocation3], 0  ;;  %s4293_s0 = inlined_call_operand.hbm [shape: f32[64,96,112], index: 0, kind: input, shape index: {}]   ;;  %s4294_s1 = inlined_call_operand.vmem [shape: f32[64,92,108], index: 1, kind: output, shape index: {}]  }
   0x1   :  { %8 = vsyncpa [#allocation3 + $0x1], 0  ;;  %s2653_s6 = smov 0   ;;  %s2655_s7 = smov 0  }
   0x2   :  { %s2657_s8 = smov 0   ;;  %s2659_s9 = smov 0  }
   0x3 LB: > { %s2517_s10 = sadd.s32 4294967295, %s2637_s9   ;;  %s2673_s11 = sadd.s32 1, %s2637_s9   ;;  %s2637_s9 = sphi %s2659_s9, %s4303_s9   ;;  %s2633_s8 = sphi %s2657_s8, %s4302_s8   ;;  %s2629_s7 = sphi %s2655_s7, %s4301_s7   ;;  %s2625_s6 = sphi %s2653_s6, %s4300_s6  }
   0x4   : > { %s18_s12 = ssub.s32 %s2637_s9, %s2673_s11  ;;  %s21_s13 = sadd.s32 1, %s2633_s8 }
   0x5   : > { %p19_p0 = scmp.eq.s32.totalorder %s18_s12, 0  ;;  %p28_p1 = scmp.ne.s32.totalorder %s2633_s8, %s2629_s7 }
   0x6   : > { %p29_p2 = scmp.eq.s32.totalorder %s2637_s9, 0  ;;  %p34_p3 = scmp.ne.s32.totalorder %s2629_s7, %s2625_s6 }
   0x7   : > { %s2683_s14 = scalar_select %p19_p0, %s2633_s8, %s21_s13  }
   0x8   : > { %p30_p4 = por %p29_p2, %p28_p1  ;;  %p35_p5 = scmp.eq.s32.totalorder %s2517_s10, 0 }
   0x9   : > { %p2539_p6 = scmp.lt.s32.totalorder %s2637_s9, 2  ;;  %s84_s16 = sand.u32 1, %s2633_s8  }
   0xa   : > { %p2688_p7 = por %p35_p5, %p34_p3  ;;  %s2529_s17 = smul.u32 3072, %s84_s16 }
   0xb   : > { %s2530_s18 = smul.u32 49152, %s2637_s9  ;;  %p2694_p8 = pnand %p2539_p6, %p30_p4 }
   0xc   : > { %s4296_s15 = scalar_select %p2688_p7, 1, 0 }
   0xd   : > { %s2701_s22 = scalar_lea.hbm %s4293_s0, %s2530_s18  ;;  %s88_s23 = scalar_lea.vmem [#allocation2], %s2529_s17 }
   0xe   : > { %s96_s24 = sshll.u32 %s88_s23, 4  ;;  %s2706_s25 = scalar_lea.sflag [#allocation3], %s84_s16  ;;  %s2703_s24 = int_to_ptr.vmem [resolvable:$true] %s96_s24 }
   0xf   : > { %s2575_s26 = scalar_lea.hbm %s2701_s22, 49152  ;;  %p2577_p11 = pneg %p2694_p8 }
  0x10   : > { %p2576_p10 = scmp.ne.s32.totalorder %s2701_s22, %s2575_s26  ;;  %s2580_s29 = scalar_lea.hbm %s4293_s0, 98304 }
  0x11   : > { %p2581_p0 = scmp.lt.s32.totalorder %s2701_s22, %s4293_s0  ;;  %p2582_p1 = scmp.lt.s32.totalorder %s2580_s29, %s2575_s26 }
  0x12   : > { %p2578_p12 = pnand %p2577_p11, %p2576_p10 }
  0x13   : > { %p2583_p2 = por %p2582_p1, %p2581_p0 }
  0x14   : > { %p2579_p13 = pneg %p2578_p12 }
  0x16   : > { %p2584_p3 = pnand %p2583_p2, %p2579_p13 }
  0x18   : > { %2587 = shalt.err (!%p2584_p3)
}
  0x19   : > { %s2588_s3 = scalar_lea.vmem %s2703_s24, 49152  ;;  %s2639_s4 = smov [#allocation2]  }
  0x1a   : > { %p2589_p4 = scmp.ne.s32.totalorder %s2703_s24, %s2588_s3  ;;  %s2593_s5 = sshll.u32 %s2639_s4, 4  ;;  %s2594_s5 = int_to_ptr.vmem [resolvable:$false] %s2593_s5 }
  0x1b   : > { %s2595_s6 = scalar_lea.vmem %s2594_s5, 98304  ;;  %p2596_p10 = scmp.lt.s32.totalorder %s2703_s24, %s2594_s5 }
  0x1c   : > { %p2591_p5 = pnand %p2589_p4, %p2577_p11  ;;  %p2597_p12 = scmp.lt.s32.totalorder %s2595_s6, %s2588_s3 }
  0x1e   : > { %p2592_p6 = pneg %p2591_p5  ;;  %p2598_p9 = por %p2597_p12, %p2596_p10 }
  0x20   : > { %p2599_p7 = pnand %p2598_p9, %p2592_p6 }
  0x22   : > { %2602 = shalt.err (!%p2599_p7)
}
  0x23   : > { %s2640_s12 = smov 128   ;;  %s2641_s13 = smov 8  }
  0x24   : > { %2538 = dma.hbm_to_vmem [thread:$0]  (!%p2694_p8), %s2701_s22, 49152, %s2703_s24, %s2706_s25, %s2640_s12, %s2640_s12, %s2641_s13  }
  0x25   : > { %p104_p11 = scmp.lt.s32.totalorder %s2637_s9, 3  ;;  %p4298_p13 = scmp.ge.s32.totalorder %s2637_s9, 1 }
  0x27   : > { %p105_p0 = pnand %p4298_p13, %p104_p11 }
  0x28   : > { %s110_s16 = sand.u32 (!%p105_p0), 1, %s2629_s7   ;;  %p4299_p7 = scmp.ne.s32.totalorder (!%p105_p0), %s4296_s15, 0 }
  0x29   : > { %108 = sbr.rel (%p105_p0) target bundleno = 929 (0x3a1), region = 24  ;;  %s111_s18 = scalar_lea.sflag (!%p105_p0), [#allocation3], %s110_s16 }
  0x2a   : > { %s2531_s17 = smul.u32 (!%p105_p0), 3072, %s110_s16 }
  0x2c   : > { %s2731_s20 = scalar_lea.vmem (!%p105_p0), [#allocation2], %s2531_s17 }
  0x2e   : > { %2620 = dma.done.wait (%p4299_p7), %s111_s18, 49152  }
  0x2f   : > { %2622 = vsyncadd (%p4299_p7), %s111_s18, 4294918144  ;;  %v144_v0 = vld [vmem:[%s2731_s20 + $0x12] sm:$0xff]  ;;  %v142_v1 = vld [vmem:[%s2731_s20 + $0x2] sm:$0xff]  ;;  %s2642_s19 = smov 126   ;;  %s2525_s15 = sshll.u32 %s2517_s10, 5  ;;  %vm2062_vm0 = vcmask 883712  }
  0x30   : > { %914 = vrot.lane.b32.xlu1 %v144_v0, %s2642_s19  ;;  %910 = vrot.lane.b32.xlu0 %v142_v1, %s2642_s19  ;;  %v145_v2 = vld [vmem:[%s2731_s20 + $0x1a] sm:$0xff]  ;;  %v143_v3 = vld [vmem:[%s2731_s20 + $0xa] sm:$0xff]  ;;  %p136_p8 = scmp.lt.s32.totalorder %s2525_s15, 63  ;;  %vm2074_vm1 = vcmask 879616  }
  0x31   : > { %v147_v4 = vld [vmem:[%s2731_s20 + $0x2a] sm:$0xff]  ;;  %v146_v5 = vld [vmem:[%s2731_s20 + $0x22] sm:$0xff]  ;;  %v149_v6 = vld [vmem:[%s2731_s20 + $0x3a] sm:$0xff] }
  0x32   : > { %v148_v7 = vld [vmem:[%s2731_s20 + $0x32] sm:$0xff]  ;;  %v151_v8 = vld [vmem:[%s2731_s20 + $0x4a] sm:$0xff]  ;;  %v150_v9 = vld [vmem:[%s2731_s20 + $0x42] sm:$0xff]  ;;  %s4305_s15 = smov (!%p136_p8, %s2525_s15), 63 }
  0x33   : > { %v153_v10 = vld [vmem:[%s2731_s20 + $0x5a] sm:$0xf]  ;;  %v152_v11 = vld [vmem:[%s2731_s20 + $0x52] sm:$0xff]  ;;  %v155_v12 = vld [vmem:[%s2731_s20 + $0x6a] sm:$0xff]  ;;  %s2532_s9 = smul.u32 96, %s4305_s15 }
  0x34   : > { %916 = vrot.lane.b32.xlu1 %v145_v2, %s2642_s19  ;;  %912 = vrot.lane.b32.xlu0 %v143_v3, %s2642_s19  ;;  %v154_v13 = vld [vmem:[%s2731_s20 + $0x62] sm:$0xff]  ;;  %v157_v14 = vld [vmem:[%s2731_s20 + $0x7a] sm:$0xff] }
  0x35   : > { %v156_v15 = vld [vmem:[%s2731_s20 + $0x72] sm:$0xff]  ;;  %v159_v16 = vld [vmem:[%s2731_s20 + $0x8a] sm:$0xff]  ;;  %v158_v17 = vld [vmem:[%s2731_s20 + $0x82] sm:$0xff]  ;;  %s2858_s22 = scalar_lea.vmem %s4294_s1, %s2532_s9 }
  0x36   : > { %v161_v18 = vld [vmem:[%s2731_s20 + $0x9a] sm:$0xff]  ;;  %v160_v19 = vld [vmem:[%s2731_s20 + $0x92] sm:$0xff]  ;;  %v163_v20 = vld [vmem:[%s2731_s20 + $0xaa] sm:$0xff] }
  0x37   : > { %v162_v21 = vld [vmem:[%s2731_s20 + $0xa2] sm:$0xff]  ;;  %v165_v22 = vld [vmem:[%s2731_s20 + $0xba] sm:$0xf]  ;;  %v164_v23 = vld [vmem:[%s2731_s20 + $0xb2] sm:$0xff] }
  0x38   : > { %920 = vrot.lane.b32.xlu1 %v147_v4, %s2642_s19  ;;  %918 = vrot.lane.b32.xlu0 %v146_v5, %s2642_s19  ;;  %v167_v24 = vld [vmem:[%s2731_s20 + $0xca] sm:$0xff]  ;;  %v166_v25 = vld [vmem:[%s2731_s20 + $0xc2] sm:$0xff] }
  0x39   : > { %v169_v26 = vld [vmem:[%s2731_s20 + $0xda] sm:$0xff]  ;;  %v168_v27 = vld [vmem:[%s2731_s20 + $0xd2] sm:$0xff]  ;;  %v171_v28 = vld [vmem:[%s2731_s20 + $0xea] sm:$0xff] }
  0x3a   : > { %v170_v29 = vld [vmem:[%s2731_s20 + $0xe2] sm:$0xff]  ;;  %v173_v30 = vld [vmem:[%s2731_s20 + $0xfa] sm:$0xff]  ;;  %v172_v31 = vld [vmem:[%s2731_s20 + $0xf2] sm:$0xff] }
  0x3b   : > { %v175_v32 = vld [vmem:[%s2731_s20 + $0x10a] sm:$0xff]  ;;  %v174_v33 = vld [vmem:[%s2731_s20 + $0x102] sm:$0xff]  ;;  %v177_v34 = vld [vmem:[%s2731_s20 + $0x11a] sm:$0xf] }
  0x3c   : > { %924 = vrot.lane.b32.xlu1 %v149_v6, %s2642_s19  ;;  %922 = vrot.lane.b32.xlu0 %v148_v7, %s2642_s19  ;;  %v176_v35 = vld [vmem:[%s2731_s20 + $0x112] sm:$0xff]  ;;  %v179_v36 = vld [vmem:[%s2731_s20 + $0x12a] sm:$0xff] }
  0x3d   : > { %v178_v37 = vld [vmem:[%s2731_s20 + $0x122] sm:$0xff]  ;;  %v181_v38 = vld [vmem:[%s2731_s20 + $0x13a] sm:$0xff]  ;;  %v180_v39 = vld [vmem:[%s2731_s20 + $0x132] sm:$0xff] }
  0x3e   : > { %v183_v40 = vld [vmem:[%s2731_s20 + $0x14a] sm:$0xff]  ;;  %v182_v41 = vld [vmem:[%s2731_s20 + $0x142] sm:$0xff]  ;;  %v185_v42 = vld [vmem:[%s2731_s20 + $0x15a] sm:$0xff] }
  0x3f   : > { %v184_v43 = vld [vmem:[%s2731_s20 + $0x152] sm:$0xff]  ;;  %v187_v44 = vld [vmem:[%s2731_s20 + $0x16a] sm:$0xff]  ;;  %v186_v45 = vld [vmem:[%s2731_s20 + $0x162] sm:$0xff] }
  0x40   : > { %928 = vrot.lane.b32.xlu1 %v151_v8, %s2642_s19  ;;  %926 = vrot.lane.b32.xlu0 %v150_v9, %s2642_s19  ;;  %v189_v46 = vld [vmem:[%s2731_s20 + $0x17a] sm:$0xf]  ;;  %v188_v47 = vld [vmem:[%s2731_s20 + $0x172] sm:$0xff] }
  0x41   : > { %v191_v48 = vld [vmem:[%s2731_s20 + $0x18a] sm:$0xff]  ;;  %v190_v49 = vld [vmem:[%s2731_s20 + $0x182] sm:$0xff]  ;;  %v193_v50 = vld [vmem:[%s2731_s20 + $0x19a] sm:$0xff] }
  0x42   : > { %v192_v51 = vld [vmem:[%s2731_s20 + $0x192] sm:$0xff]  ;;  %v195_v52 = vld [vmem:[%s2731_s20 + $0x1aa] sm:$0xff]  ;;  %v194_v53 = vld [vmem:[%s2731_s20 + $0x1a2] sm:$0xff] }
  0x43   : > { %v197_v54 = vld [vmem:[%s2731_s20 + $0x1ba] sm:$0xff]  ;;  %v196_v55 = vld [vmem:[%s2731_s20 + $0x1b2] sm:$0xff]  ;;  %v199_v56 = vld [vmem:[%s2731_s20 + $0x1ca] sm:$0xff] }
  0x44   : > { %932 = vrot.lane.b32.xlu1 %v153_v10, %s2642_s19  ;;  %930 = vrot.lane.b32.xlu0 %v152_v11, %s2642_s19  ;;  %v198_v57 = vld [vmem:[%s2731_s20 + $0x1c2] sm:$0xff]  ;;  %v201_v58 = vld [vmem:[%s2731_s20 + $0x1da] sm:$0xf] }
  0x45   : > { %v200_v59 = vld [vmem:[%s2731_s20 + $0x1d2] sm:$0xff]  ;;  %v203_v62 = vld [vmem:[%s2731_s20 + $0x1ea] sm:$0xff]  ;;  %v202_v63 = vld [vmem:[%s2731_s20 + $0x1e2] sm:$0xff] }
  0x46   : > { %v205_v2 = vld [vmem:[%s2731_s20 + $0x1fa] sm:$0xff]  ;;  %v204_v3 = vld [vmem:[%s2731_s20 + $0x1f2] sm:$0xff]  ;;  %v207_v6 = vld [vmem:[%s2731_s20 + $0x20a] sm:$0xff] }
  0x47   : > { %v206_v7 = vld [vmem:[%s2731_s20 + $0x202] sm:$0xff]  ;;  %v209_v10 = vld [vmem:[%s2731_s20 + $0x21a] sm:$0xff]  ;;  %v208_v11 = vld [vmem:[%s2731_s20 + $0x212] sm:$0xff] }
  0x48   : > { %936 = vrot.lane.b32.xlu1 %v155_v12, %s2642_s19  ;;  %934 = vrot.lane.b32.xlu0 %v154_v13, %s2642_s19 }
  0x4c   : > { %940 = vrot.lane.b32.xlu1 %v157_v14, %s2642_s19  ;;  %938 = vrot.lane.b32.xlu0 %v156_v15, %s2642_s19  ;;  %v211_v14 = vld [vmem:[%s2731_s20 + $0x22a] sm:$0xff]  ;;  %v210_v15 = vld [vmem:[%s2731_s20 + $0x222] sm:$0xff] }
  0x50   : > { %944 = vrot.lane.b32.xlu1 %v159_v16, %s2642_s19  ;;  %942 = vrot.lane.b32.xlu0 %v158_v17, %s2642_s19 }
  0x54   : > { %948 = vrot.lane.b32.xlu1 %v161_v18, %s2642_s19  ;;  %946 = vrot.lane.b32.xlu0 %v160_v19, %s2642_s19  ;;  %v213_v18 = vld [vmem:[%s2731_s20 + $0x23a] sm:$0xf]  ;;  %v212_v19 = vld [vmem:[%s2731_s20 + $0x232] sm:$0xff] }
  0x58   : > { %952 = vrot.lane.b32.xlu1 %v163_v20, %s2642_s19  ;;  %950 = vrot.lane.b32.xlu0 %v162_v21, %s2642_s19 }
  0x5c   : > { %956 = vrot.lane.b32.xlu1 %v165_v22, %s2642_s19  ;;  %954 = vrot.lane.b32.xlu0 %v164_v23, %s2642_s19  ;;  %v215_v22 = vld [vmem:[%s2731_s20 + $0x24a] sm:$0xff]  ;;  %v214_v23 = vld [vmem:[%s2731_s20 + $0x242] sm:$0xff] }
  0x60   : > { %960 = vrot.lane.b32.xlu1 %v167_v24, %s2642_s19  ;;  %958 = vrot.lane.b32.xlu0 %v166_v25, %s2642_s19 }
  0x64   : > { %964 = vrot.lane.b32.xlu1 %v169_v26, %s2642_s19  ;;  %962 = vrot.lane.b32.xlu0 %v168_v27, %s2642_s19  ;;  %v217_v26 = vld [vmem:[%s2731_s20 + $0x25a] sm:$0xff]  ;;  %v216_v27 = vld [vmem:[%s2731_s20 + $0x252] sm:$0xff] }
  0x68   : > { %968 = vrot.lane.b32.xlu1 %v171_v28, %s2642_s19  ;;  %966 = vrot.lane.b32.xlu0 %v170_v29, %s2642_s19 }
  0x6c   : > { %972 = vrot.lane.b32.xlu1 %v173_v30, %s2642_s19  ;;  %970 = vrot.lane.b32.xlu0 %v172_v31, %s2642_s19  ;;  %v219_v30 = vld [vmem:[%s2731_s20 + $0x26a] sm:$0xff]  ;;  %v218_v31 = vld [vmem:[%s2731_s20 + $0x262] sm:$0xff] }
  0x70   : > { %976 = vrot.lane.b32.xlu1 %v175_v32, %s2642_s19  ;;  %974 = vrot.lane.b32.xlu0 %v174_v33, %s2642_s19 }
  0x74   : > { %980 = vrot.lane.b32.xlu1 %v177_v34, %s2642_s19  ;;  %978 = vrot.lane.b32.xlu0 %v176_v35, %s2642_s19  ;;  %v221_v34 = vld [vmem:[%s2731_s20 + $0x27a] sm:$0xff]  ;;  %v220_v35 = vld [vmem:[%s2731_s20 + $0x272] sm:$0xff] }
  0x78   : > { %984 = vrot.lane.b32.xlu1 %v179_v36, %s2642_s19  ;;  %982 = vrot.lane.b32.xlu0 %v178_v37, %s2642_s19 }
  0x7c   : > { %988 = vrot.lane.b32.xlu1 %v181_v38, %s2642_s19  ;;  %986 = vrot.lane.b32.xlu0 %v180_v39, %s2642_s19  ;;  %v223_v38 = vld [vmem:[%s2731_s20 + $0x28a] sm:$0xff]  ;;  %v222_v39 = vld [vmem:[%s2731_s20 + $0x282] sm:$0xff] }
  0x80   : > { %992 = vrot.lane.b32.xlu1 %v183_v40, %s2642_s19  ;;  %990 = vrot.lane.b32.xlu0 %v182_v41, %s2642_s19 }
  0x84   : > { %996 = vrot.lane.b32.xlu1 %v185_v42, %s2642_s19  ;;  %994 = vrot.lane.b32.xlu0 %v184_v43, %s2642_s19  ;;  %v225_v42 = vld [vmem:[%s2731_s20 + $0x29a] sm:$0xf]  ;;  %v224_v43 = vld [vmem:[%s2731_s20 + $0x292] sm:$0xff] }
  0x88   : > { %1000 = vrot.lane.b32.xlu1 %v187_v44, %s2642_s19  ;;  %998 = vrot.lane.b32.xlu0 %v186_v45, %s2642_s19 }
  0x8c   : > { %1004 = vrot.lane.b32.xlu1 %v189_v46, %s2642_s19  ;;  %1002 = vrot.lane.b32.xlu0 %v188_v47, %s2642_s19  ;;  %v227_v46 = vld [vmem:[%s2731_s20 + $0x2aa] sm:$0xff]  ;;  %v226_v47 = vld [vmem:[%s2731_s20 + $0x2a2] sm:$0xff] }
  0x90   : > { %1008 = vrot.lane.b32.xlu1 %v191_v48, %s2642_s19  ;;  %1006 = vrot.lane.b32.xlu0 %v190_v49, %s2642_s19 }
  0x94   : > { %1012 = vrot.lane.b32.xlu1 %v193_v50, %s2642_s19  ;;  %1010 = vrot.lane.b32.xlu0 %v192_v51, %s2642_s19  ;;  %v229_v50 = vld [vmem:[%s2731_s20 + $0x2ba] sm:$0xff]  ;;  %v228_v51 = vld [vmem:[%s2731_s20 + $0x2b2] sm:$0xff] }
  0x98   : > { %1016 = vrot.lane.b32.xlu1 %v195_v52, %s2642_s19  ;;  %1014 = vrot.lane.b32.xlu0 %v194_v53, %s2642_s19 }
  0x9c   : > { %1020 = vrot.lane.b32.xlu1 %v197_v54, %s2642_s19  ;;  %1018 = vrot.lane.b32.xlu0 %v196_v55, %s2642_s19  ;;  %v231_v54 = vld [vmem:[%s2731_s20 + $0x2ca] sm:$0xff]  ;;  %v230_v55 = vld [vmem:[%s2731_s20 + $0x2c2] sm:$0xff] }
  0xa0   : > { %1024 = vrot.lane.b32.xlu1 %v199_v56, %s2642_s19  ;;  %1022 = vrot.lane.b32.xlu0 %v198_v57, %s2642_s19 }
  0xa2   : > { %v915_v60 = vpop.permute.xlu1 %914  ;;  %v911_v61 = vpop.permute.xlu0 %910 }
  0xa3   : > { %2065 = vst.msk [vmem:[%s2858_s22 + $0x10] sm:$0xff] %vm2062_vm0, %v915_v60  ;;  %2063 = vst.msk [vmem:[%s2858_s22] sm:$0xff] %vm2062_vm0, %v911_v61 }
  0xa4   : > { %1028 = vrot.lane.b32.xlu1 %v201_v58, %s2642_s19  ;;  %1026 = vrot.lane.b32.xlu0 %v200_v59, %s2642_s19  ;;  %v233_v58 = vld [vmem:[%s2731_s20 + $0x2da] sm:$0xff]  ;;  %v232_v59 = vld [vmem:[%s2731_s20 + $0x2d2] sm:$0xff] }
  0xa6   : > { %v917_v0 = vpop.permute.xlu1 %916  ;;  %v913_v1 = vpop.permute.xlu0 %912 }
  0xa7   : > { %2066 = vst.msk [vmem:[%s2858_s22 + $0x18] sm:$0xff] %vm2062_vm0, %v917_v0  ;;  %2064 = vst.msk [vmem:[%s2858_s22 + $0x8] sm:$0xff] %vm2062_vm0, %v913_v1 }
  0xa8   : > { %1032 = vrot.lane.b32.xlu1 %v203_v62, %s2642_s19  ;;  %1030 = vrot.lane.b32.xlu0 %v202_v63, %s2642_s19  ;;  %v235_v62 = vld [vmem:[%s2731_s20 + $0x2ea] sm:$0xff]  ;;  %v234_v63 = vld [vmem:[%s2731_s20 + $0x2e2] sm:$0xff] }
  0xaa   : > { %v921_v4 = vpop.permute.xlu1 %920  ;;  %v919_v5 = vpop.permute.xlu0 %918 }
  0xab   : > { %2068 = vst.msk [vmem:[%s2858_s22 + $0x28] sm:$0xff] %vm2062_vm0, %v921_v4  ;;  %2067 = vst.msk [vmem:[%s2858_s22 + $0x20] sm:$0xff] %vm2062_vm0, %v919_v5 }
  0xac   : > { %1036 = vrot.lane.b32.xlu1 %v205_v2, %s2642_s19  ;;  %1034 = vrot.lane.b32.xlu0 %v204_v3, %s2642_s19  ;;  %v237_v2 = vld [vmem:[%s2731_s20 + $0x2fa] sm:$0xf]  ;;  %v236_v3 = vld [vmem:[%s2731_s20 + $0x2f2] sm:$0xff] }
  0xae   : > { %v925_v8 = vpop.permute.xlu1 %924  ;;  %v923_v9 = vpop.permute.xlu0 %922 }
  0xaf   : > { %2070 = vst.msk [vmem:[%s2858_s22 + $0x38] sm:$0xff] %vm2062_vm0, %v925_v8  ;;  %2069 = vst.msk [vmem:[%s2858_s22 + $0x30] sm:$0xff] %vm2062_vm0, %v923_v9 }
  0xb0   : > { %1040 = vrot.lane.b32.xlu1 %v207_v6, %s2642_s19  ;;  %1038 = vrot.lane.b32.xlu0 %v206_v7, %s2642_s19  ;;  %v239_v6 = vld [vmem:[%s2731_s20 + $0x30a] sm:$0xff]  ;;  %v238_v7 = vld [vmem:[%s2731_s20 + $0x302] sm:$0xff] }
  0xb2   : > { %v929_v12 = vpop.permute.xlu1 %928  ;;  %v927_v13 = vpop.permute.xlu0 %926 }
  0xb3   : > { %2072 = vst.msk [vmem:[%s2858_s22 + $0x48] sm:$0xff] %vm2062_vm0, %v929_v12  ;;  %2071 = vst.msk [vmem:[%s2858_s22 + $0x40] sm:$0xff] %vm2062_vm0, %v927_v13 }
  0xb4   : > { %1044 = vrot.lane.b32.xlu1 %v209_v10, %s2642_s19  ;;  %1042 = vrot.lane.b32.xlu0 %v208_v11, %s2642_s19  ;;  %v241_v10 = vld [vmem:[%s2731_s20 + $0x31a] sm:$0xff]  ;;  %v240_v11 = vld [vmem:[%s2731_s20 + $0x312] sm:$0xff] }
  0xb6   : > { %v933_v16 = vpop.permute.xlu1 %932  ;;  %v931_v17 = vpop.permute.xlu0 %930 }
  0xb7   : > { %2075 = vst.msk [vmem:[%s2858_s22 + $0x58] sm:$0xf] %vm2074_vm1, %v933_v16 }
  0xb8   : > { %2073 = vst.msk [vmem:[%s2858_s22 + $0x50] sm:$0xff] %vm2062_vm0, %v931_v17  ;;  %1048 = vrot.lane.b32.xlu1 %v211_v14, %s2642_s19  ;;  %1046 = vrot.lane.b32.xlu0 %v210_v15, %s2642_s19  ;;  %v243_v14 = vld [vmem:[%s2731_s20 + $0x32a] sm:$0xff] }
  0xb9   : > { %v242_v15 = vld [vmem:[%s2731_s20 + $0x322] sm:$0xff] }
  0xba   : > { %v937_v20 = vpop.permute.xlu1 %936  ;;  %v935_v21 = vpop.permute.xlu0 %934 }
  0xbb   : > { %2077 = vst.msk [vmem:[%s2858_s22 + $0x68] sm:$0xff] %vm2062_vm0, %v937_v20  ;;  %2076 = vst.msk [vmem:[%s2858_s22 + $0x60] sm:$0xff] %vm2062_vm0, %v935_v21 }
  0xbc   : > { %1052 = vrot.lane.b32.xlu1 %v213_v18, %s2642_s19  ;;  %1050 = vrot.lane.b32.xlu0 %v212_v19, %s2642_s19  ;;  %v245_v18 = vld [vmem:[%s2731_s20 + $0x33a] sm:$0xff]  ;;  %v244_v19 = vld [vmem:[%s2731_s20 + $0x332] sm:$0xff] }
  0xbe   : > { %v941_v24 = vpop.permute.xlu1 %940  ;;  %v939_v25 = vpop.permute.xlu0 %938 }
  0xbf   : > { %2079 = vst.msk [vmem:[%s2858_s22 + $0x78] sm:$0xff] %vm2062_vm0, %v941_v24  ;;  %2078 = vst.msk [vmem:[%s2858_s22 + $0x70] sm:$0xff] %vm2062_vm0, %v939_v25 }
  0xc0   : > { %1056 = vrot.lane.b32.xlu1 %v215_v22, %s2642_s19  ;;  %1054 = vrot.lane.b32.xlu0 %v214_v23, %s2642_s19  ;;  %v247_v22 = vld [vmem:[%s2731_s20 + $0x34a] sm:$0xff]  ;;  %v246_v23 = vld [vmem:[%s2731_s20 + $0x342] sm:$0xff] }
  0xc2   : > { %v945_v28 = vpop.permute.xlu1 %944  ;;  %v943_v29 = vpop.permute.xlu0 %942 }
  0xc3   : > { %2081 = vst.msk [vmem:[%s2858_s22 + $0x88] sm:$0xff] %vm2062_vm0, %v945_v28  ;;  %2080 = vst.msk [vmem:[%s2858_s22 + $0x80] sm:$0xff] %vm2062_vm0, %v943_v29 }
  0xc4   : > { %1060 = vrot.lane.b32.xlu1 %v217_v26, %s2642_s19  ;;  %1058 = vrot.lane.b32.xlu0 %v216_v27, %s2642_s19  ;;  %v249_v26 = vld [vmem:[%s2731_s20 + $0x35a] sm:$0xf]  ;;  %v248_v27 = vld [vmem:[%s2731_s20 + $0x352] sm:$0xff] }
  0xc6   : > { %v949_v32 = vpop.permute.xlu1 %948  ;;  %v947_v33 = vpop.permute.xlu0 %946 }
  0xc7   : > { %2083 = vst.msk [vmem:[%s2858_s22 + $0x98] sm:$0xff] %vm2062_vm0, %v949_v32  ;;  %2082 = vst.msk [vmem:[%s2858_s22 + $0x90] sm:$0xff] %vm2062_vm0, %v947_v33 }
  0xc8   : > { %1064 = vrot.lane.b32.xlu1 %v219_v30, %s2642_s19  ;;  %1062 = vrot.lane.b32.xlu0 %v218_v31, %s2642_s19  ;;  %v251_v30 = vld [vmem:[%s2731_s20 + $0x36a] sm:$0xff]  ;;  %v250_v31 = vld [vmem:[%s2731_s20 + $0x362] sm:$0xff] }
  0xca   : > { %v953_v36 = vpop.permute.xlu1 %952  ;;  %v951_v37 = vpop.permute.xlu0 %950 }
  0xcb   : > { %2085 = vst.msk [vmem:[%s2858_s22 + $0xa8] sm:$0xff] %vm2062_vm0, %v953_v36  ;;  %2084 = vst.msk [vmem:[%s2858_s22 + $0xa0] sm:$0xff] %vm2062_vm0, %v951_v37 }
  0xcc   : > { %1068 = vrot.lane.b32.xlu1 %v221_v34, %s2642_s19  ;;  %1066 = vrot.lane.b32.xlu0 %v220_v35, %s2642_s19  ;;  %v253_v34 = vld [vmem:[%s2731_s20 + $0x37a] sm:$0xff]  ;;  %v252_v35 = vld [vmem:[%s2731_s20 + $0x372] sm:$0xff] }
  0xce   : > { %v957_v40 = vpop.permute.xlu1 %956  ;;  %v955_v41 = vpop.permute.xlu0 %954 }
  0xcf   : > { %2087 = vst.msk [vmem:[%s2858_s22 + $0xb8] sm:$0xf] %vm2074_vm1, %v957_v40 }
  0xd0   : > { %2086 = vst.msk [vmem:[%s2858_s22 + $0xb0] sm:$0xff] %vm2062_vm0, %v955_v41  ;;  %1072 = vrot.lane.b32.xlu1 %v223_v38, %s2642_s19  ;;  %1070 = vrot.lane.b32.xlu0 %v222_v39, %s2642_s19  ;;  %v255_v38 = vld [vmem:[%s2731_s20 + $0x38a] sm:$0xff] }
  0xd1   : > { %v254_v39 = vld [vmem:[%s2731_s20 + $0x382] sm:$0xff] }
  0xd2   : > { %v961_v44 = vpop.permute.xlu1 %960  ;;  %v959_v45 = vpop.permute.xlu0 %958 }
  0xd3   : > { %2089 = vst.msk [vmem:[%s2858_s22 + $0xc8] sm:$0xff] %vm2062_vm0, %v961_v44  ;;  %2088 = vst.msk [vmem:[%s2858_s22 + $0xc0] sm:$0xff] %vm2062_vm0, %v959_v45 }
  0xd4   : > { %1076 = vrot.lane.b32.xlu1 %v225_v42, %s2642_s19  ;;  %1074 = vrot.lane.b32.xlu0 %v224_v43, %s2642_s19  ;;  %v257_v42 = vld [vmem:[%s2731_s20 + $0x39a] sm:$0xff]  ;;  %v256_v43 = vld [vmem:[%s2731_s20 + $0x392] sm:$0xff] }
  0xd6   : > { %v965_v48 = vpop.permute.xlu1 %964  ;;  %v963_v49 = vpop.permute.xlu0 %962 }
  0xd7   : > { %2091 = vst.msk [vmem:[%s2858_s22 + $0xd8] sm:$0xff] %vm2062_vm0, %v965_v48  ;;  %2090 = vst.msk [vmem:[%s2858_s22 + $0xd0] sm:$0xff] %vm2062_vm0, %v963_v49 }
  0xd8   : > { %1080 = vrot.lane.b32.xlu1 %v227_v46, %s2642_s19  ;;  %1078 = vrot.lane.b32.xlu0 %v226_v47, %s2642_s19  ;;  %v259_v46 = vld [vmem:[%s2731_s20 + $0x3aa] sm:$0xff]  ;;  %v258_v47 = vld [vmem:[%s2731_s20 + $0x3a2] sm:$0xff] }
  0xda   : > { %v969_v52 = vpop.permute.xlu1 %968  ;;  %v967_v53 = vpop.permute.xlu0 %966 }
  0xdb   : > { %2093 = vst.msk [vmem:[%s2858_s22 + $0xe8] sm:$0xff] %vm2062_vm0, %v969_v52  ;;  %2092 = vst.msk [vmem:[%s2858_s22 + $0xe0] sm:$0xff] %vm2062_vm0, %v967_v53 }
  0xdc   : > { %1084 = vrot.lane.b32.xlu1 %v229_v50, %s2642_s19  ;;  %1082 = vrot.lane.b32.xlu0 %v228_v51, %s2642_s19  ;;  %v261_v50 = vld [vmem:[%s2731_s20 + $0x3ba] sm:$0xf]  ;;  %v260_v51 = vld [vmem:[%s2731_s20 + $0x3b2] sm:$0xff] }
  0xde   : > { %v973_v56 = vpop.permute.xlu1 %972  ;;  %v971_v57 = vpop.permute.xlu0 %970 }
  0xdf   : > { %2095 = vst.msk [vmem:[%s2858_s22 + $0xf8] sm:$0xff] %vm2062_vm0, %v973_v56  ;;  %2094 = vst.msk [vmem:[%s2858_s22 + $0xf0] sm:$0xff] %vm2062_vm0, %v971_v57 }
  0xe0   : > { %1088 = vrot.lane.b32.xlu1 %v231_v54, %s2642_s19  ;;  %1086 = vrot.lane.b32.xlu0 %v230_v55, %s2642_s19  ;;  %v263_v54 = vld [vmem:[%s2731_s20 + $0x3ca] sm:$0xff]  ;;  %v262_v55 = vld [vmem:[%s2731_s20 + $0x3c2] sm:$0xff] }
  0xe2   : > { %v977_v60 = vpop.permute.xlu1 %976  ;;  %v975_v61 = vpop.permute.xlu0 %974 }
  0xe3   : > { %2097 = vst.msk [vmem:[%s2858_s22 + $0x108] sm:$0xff] %vm2062_vm0, %v977_v60  ;;  %2096 = vst.msk [vmem:[%s2858_s22 + $0x100] sm:$0xff] %vm2062_vm0, %v975_v61 }
  0xe4   : > { %1092 = vrot.lane.b32.xlu1 %v233_v58, %s2642_s19  ;;  %1090 = vrot.lane.b32.xlu0 %v232_v59, %s2642_s19  ;;  %v265_v58 = vld [vmem:[%s2731_s20 + $0x3da] sm:$0xff]  ;;  %v264_v59 = vld [vmem:[%s2731_s20 + $0x3d2] sm:$0xff] }
  0xe6   : > { %v981_v0 = vpop.permute.xlu1 %980  ;;  %v979_v1 = vpop.permute.xlu0 %978 }
  0xe7   : > { %2099 = vst.msk [vmem:[%s2858_s22 + $0x118] sm:$0xf] %vm2074_vm1, %v981_v0 }
  0xe8   : > { %2098 = vst.msk [vmem:[%s2858_s22 + $0x110] sm:$0xff] %vm2062_vm0, %v979_v1  ;;  %1096 = vrot.lane.b32.xlu1 %v235_v62, %s2642_s19  ;;  %1094 = vrot.lane.b32.xlu0 %v234_v63, %s2642_s19  ;;  %v267_v62 = vld [vmem:[%s2731_s20 + $0x3ea] sm:$0xff] }
  0xe9   : > { %v266_v63 = vld [vmem:[%s2731_s20 + $0x3e2] sm:$0xff] }
  0xea   : > { %v985_v4 = vpop.permute.xlu1 %984  ;;  %v983_v5 = vpop.permute.xlu0 %982 }
  0xeb   : > { %2101 = vst.msk [vmem:[%s2858_s22 + $0x128] sm:$0xff] %vm2062_vm0, %v985_v4  ;;  %2100 = vst.msk [vmem:[%s2858_s22 + $0x120] sm:$0xff] %vm2062_vm0, %v983_v5 }
  0xec   : > { %1100 = vrot.lane.b32.xlu1 %v237_v2, %s2642_s19  ;;  %1098 = vrot.lane.b32.xlu0 %v236_v3, %s2642_s19  ;;  %v269_v2 = vld [vmem:[%s2731_s20 + $0x3fa] sm:$0xff]  ;;  %v268_v3 = vld [vmem:[%s2731_s20 + $0x3f2] sm:$0xff] }
  0xee   : > { %v989_v8 = vpop.permute.xlu1 %988  ;;  %v987_v9 = vpop.permute.xlu0 %986 }
  0xef   : > { %2103 = vst.msk [vmem:[%s2858_s22 + $0x138] sm:$0xff] %vm2062_vm0, %v989_v8  ;;  %2102 = vst.msk [vmem:[%s2858_s22 + $0x130] sm:$0xff] %vm2062_vm0, %v987_v9 }
  0xf0   : > { %1104 = vrot.lane.b32.xlu1 %v239_v6, %s2642_s19  ;;  %1102 = vrot.lane.b32.xlu0 %v238_v7, %s2642_s19  ;;  %v271_v6 = vld [vmem:[%s2731_s20 + $0x40a] sm:$0xff]  ;;  %v270_v7 = vld [vmem:[%s2731_s20 + $0x402] sm:$0xff] }
  0xf2   : > { %v993_v12 = vpop.permute.xlu1 %992  ;;  %v991_v13 = vpop.permute.xlu0 %990 }
  0xf3   : > { %2105 = vst.msk [vmem:[%s2858_s22 + $0x148] sm:$0xff] %vm2062_vm0, %v993_v12  ;;  %2104 = vst.msk [vmem:[%s2858_s22 + $0x140] sm:$0xff] %vm2062_vm0, %v991_v13 }
  0xf4   : > { %1108 = vrot.lane.b32.xlu1 %v241_v10, %s2642_s19  ;;  %1106 = vrot.lane.b32.xlu0 %v240_v11, %s2642_s19  ;;  %v273_v10 = vld [vmem:[%s2731_s20 + $0x41a] sm:$0xf]  ;;  %v272_v11 = vld [vmem:[%s2731_s20 + $0x412] sm:$0xff] }
  0xf6   : > { %v997_v16 = vpop.permute.xlu1 %996  ;;  %v995_v17 = vpop.permute.xlu0 %994 }
  0xf7   : > { %2107 = vst.msk [vmem:[%s2858_s22 + $0x158] sm:$0xff] %vm2062_vm0, %v997_v16  ;;  %2106 = vst.msk [vmem:[%s2858_s22 + $0x150] sm:$0xff] %vm2062_vm0, %v995_v17 }
  0xf8   : > { %1112 = vrot.lane.b32.xlu1 %v243_v14, %s2642_s19  ;;  %1110 = vrot.lane.b32.xlu0 %v242_v15, %s2642_s19  ;;  %v275_v14 = vld [vmem:[%s2731_s20 + $0x42a] sm:$0xff]  ;;  %v274_v15 = vld [vmem:[%s2731_s20 + $0x422] sm:$0xff] }
  0xfa   : > { %v1001_v20 = vpop.permute.xlu1 %1000  ;;  %v999_v21 = vpop.permute.xlu0 %998 }
  0xfb   : > { %2109 = vst.msk [vmem:[%s2858_s22 + $0x168] sm:$0xff] %vm2062_vm0, %v1001_v20  ;;  %2108 = vst.msk [vmem:[%s2858_s22 + $0x160] sm:$0xff] %vm2062_vm0, %v999_v21 }
  0xfc   : > { %1116 = vrot.lane.b32.xlu1 %v245_v18, %s2642_s19  ;;  %1114 = vrot.lane.b32.xlu0 %v244_v19, %s2642_s19  ;;  %v277_v18 = vld [vmem:[%s2731_s20 + $0x43a] sm:$0xff]  ;;  %v276_v19 = vld [vmem:[%s2731_s20 + $0x432] sm:$0xff] }
  0xfe   : > { %v1005_v24 = vpop.permute.xlu1 %1004  ;;  %v1003_v25 = vpop.permute.xlu0 %1002 }
  0xff   : > { %2111 = vst.msk [vmem:[%s2858_s22 + $0x178] sm:$0xf] %vm2074_vm1, %v1005_v24 }
 0x100   : > { %2110 = vst.msk [vmem:[%s2858_s22 + $0x170] sm:$0xff] %vm2062_vm0, %v1003_v25  ;;  %1120 = vrot.lane.b32.xlu1 %v247_v22, %s2642_s19  ;;  %1118 = vrot.lane.b32.xlu0 %v246_v23, %s2642_s19  ;;  %v279_v22 = vld [vmem:[%s2731_s20 + $0x44a] sm:$0xff] }
 0x101   : > { %v278_v23 = vld [vmem:[%s2731_s20 + $0x442] sm:$0xff] }
 0x102   : > { %v1009_v28 = vpop.permute.xlu1 %1008  ;;  %v1007_v29 = vpop.permute.xlu0 %1006 }
 0x103   : > { %2113 = vst.msk [vmem:[%s2858_s22 + $0x188] sm:$0xff] %vm2062_vm0, %v1009_v28  ;;  %2112 = vst.msk [vmem:[%s2858_s22 + $0x180] sm:$0xff] %vm2062_vm0, %v1007_v29 }
 0x104   : > { %1124 = vrot.lane.b32.xlu1 %v249_v26, %s2642_s19  ;;  %1122 = vrot.lane.b32.xlu0 %v248_v27, %s2642_s19  ;;  %v281_v26 = vld [vmem:[%s2731_s20 + $0x45a] sm:$0xff]  ;;  %v280_v27 = vld [vmem:[%s2731_s20 + $0x452] sm:$0xff] }
 0x106   : > { %v1013_v32 = vpop.permute.xlu1 %1012  ;;  %v1011_v33 = vpop.permute.xlu0 %1010 }
 0x107   : > { %2115 = vst.msk [vmem:[%s2858_s22 + $0x198] sm:$0xff] %vm2062_vm0, %v1013_v32  ;;  %2114 = vst.msk [vmem:[%s2858_s22 + $0x190] sm:$0xff] %vm2062_vm0, %v1011_v33 }
 0x108   : > { %1128 = vrot.lane.b32.xlu1 %v251_v30, %s2642_s19  ;;  %1126 = vrot.lane.b32.xlu0 %v250_v31, %s2642_s19  ;;  %v283_v30 = vld [vmem:[%s2731_s20 + $0x46a] sm:$0xff]  ;;  %v282_v31 = vld [vmem:[%s2731_s20 + $0x462] sm:$0xff] }
 0x10a   : > { %v1017_v36 = vpop.permute.xlu1 %1016  ;;  %v1015_v37 = vpop.permute.xlu0 %1014 }
 0x10b   : > { %2117 = vst.msk [vmem:[%s2858_s22 + $0x1a8] sm:$0xff] %vm2062_vm0, %v1017_v36  ;;  %2116 = vst.msk [vmem:[%s2858_s22 + $0x1a0] sm:$0xff] %vm2062_vm0, %v1015_v37 }
 0x10c   : > { %1132 = vrot.lane.b32.xlu1 %v253_v34, %s2642_s19  ;;  %1130 = vrot.lane.b32.xlu0 %v252_v35, %s2642_s19  ;;  %v285_v34 = vld [vmem:[%s2731_s20 + $0x47a] sm:$0xf]  ;;  %v284_v35 = vld [vmem:[%s2731_s20 + $0x472] sm:$0xff] }
 0x10e   : > { %v1021_v40 = vpop.permute.xlu1 %1020  ;;  %v1019_v41 = vpop.permute.xlu0 %1018 }
 0x10f   : > { %2119 = vst.msk [vmem:[%s2858_s22 + $0x1b8] sm:$0xff] %vm2062_vm0, %v1021_v40  ;;  %2118 = vst.msk [vmem:[%s2858_s22 + $0x1b0] sm:$0xff] %vm2062_vm0, %v1019_v41 }
 0x110   : > { %1136 = vrot.lane.b32.xlu1 %v255_v38, %s2642_s19  ;;  %1134 = vrot.lane.b32.xlu0 %v254_v39, %s2642_s19  ;;  %v287_v38 = vld [vmem:[%s2731_s20 + $0x48a] sm:$0xff]  ;;  %v286_v39 = vld [vmem:[%s2731_s20 + $0x482] sm:$0xff] }
 0x112   : > { %v1025_v44 = vpop.permute.xlu1 %1024  ;;  %v1023_v45 = vpop.permute.xlu0 %1022 }
 0x113   : > { %2121 = vst.msk [vmem:[%s2858_s22 + $0x1c8] sm:$0xff] %vm2062_vm0, %v1025_v44  ;;  %2120 = vst.msk [vmem:[%s2858_s22 + $0x1c0] sm:$0xff] %vm2062_vm0, %v1023_v45 }
 0x114   : > { %1140 = vrot.lane.b32.xlu1 %v257_v42, %s2642_s19  ;;  %1138 = vrot.lane.b32.xlu0 %v256_v43, %s2642_s19  ;;  %v289_v42 = vld [vmem:[%s2731_s20 + $0x49a] sm:$0xff]  ;;  %v288_v43 = vld [vmem:[%s2731_s20 + $0x492] sm:$0xff] }
 0x116   : > { %v1029_v48 = vpop.permute.xlu1 %1028  ;;  %v1027_v49 = vpop.permute.xlu0 %1026 }
 0x117   : > { %2123 = vst.msk [vmem:[%s2858_s22 + $0x1d8] sm:$0xf] %vm2074_vm1, %v1029_v48 }
 0x118   : > { %2122 = vst.msk [vmem:[%s2858_s22 + $0x1d0] sm:$0xff] %vm2062_vm0, %v1027_v49  ;;  %1144 = vrot.lane.b32.xlu1 %v259_v46, %s2642_s19  ;;  %1142 = vrot.lane.b32.xlu0 %v258_v47, %s2642_s19  ;;  %v291_v46 = vld [vmem:[%s2731_s20 + $0x4aa] sm:$0xff] }
 0x119   : > { %v290_v47 = vld [vmem:[%s2731_s20 + $0x4a2] sm:$0xff] }
 0x11a   : > { %v1033_v52 = vpop.permute.xlu1 %1032  ;;  %v1031_v53 = vpop.permute.xlu0 %1030 }
 0x11b   : > { %2125 = vst.msk [vmem:[%s2858_s22 + $0x1e8] sm:$0xff] %vm2062_vm0, %v1033_v52  ;;  %2124 = vst.msk [vmem:[%s2858_s22 + $0x1e0] sm:$0xff] %vm2062_vm0, %v1031_v53 }
 0x11c   : > { %1148 = vrot.lane.b32.xlu1 %v261_v50, %s2642_s19  ;;  %1146 = vrot.lane.b32.xlu0 %v260_v51, %s2642_s19  ;;  %v293_v50 = vld [vmem:[%s2731_s20 + $0x4ba] sm:$0xff]  ;;  %v292_v51 = vld [vmem:[%s2731_s20 + $0x4b2] sm:$0xff] }
 0x11e   : > { %v1037_v56 = vpop.permute.xlu1 %1036  ;;  %v1035_v57 = vpop.permute.xlu0 %1034 }
 0x11f   : > { %2127 = vst.msk [vmem:[%s2858_s22 + $0x1f8] sm:$0xff] %vm2062_vm0, %v1037_v56  ;;  %2126 = vst.msk [vmem:[%s2858_s22 + $0x1f0] sm:$0xff] %vm2062_vm0, %v1035_v57 }
 0x120   : > { %1152 = vrot.lane.b32.xlu1 %v263_v54, %s2642_s19  ;;  %1150 = vrot.lane.b32.xlu0 %v262_v55, %s2642_s19  ;;  %v295_v54 = vld [vmem:[%s2731_s20 + $0x4ca] sm:$0xff]  ;;  %v294_v55 = vld [vmem:[%s2731_s20 + $0x4c2] sm:$0xff] }
 0x122   : > { %v1041_v60 = vpop.permute.xlu1 %1040  ;;  %v1039_v61 = vpop.permute.xlu0 %1038 }
 0x123   : > { %2129 = vst.msk [vmem:[%s2858_s22 + $0x208] sm:$0xff] %vm2062_vm0, %v1041_v60  ;;  %2128 = vst.msk [vmem:[%s2858_s22 + $0x200] sm:$0xff] %vm2062_vm0, %v1039_v61 }
 0x124   : > { %1156 = vrot.lane.b32.xlu1 %v265_v58, %s2642_s19  ;;  %1154 = vrot.lane.b32.xlu0 %v264_v59, %s2642_s19  ;;  %v297_v58 = vld [vmem:[%s2731_s20 + $0x4da] sm:$0xf]  ;;  %v296_v59 = vld [vmem:[%s2731_s20 + $0x4d2] sm:$0xff] }
 0x126   : > { %v1045_v0 = vpop.permute.xlu1 %1044  ;;  %v1043_v1 = vpop.permute.xlu0 %1042 }
 0x127   : > { %2131 = vst.msk [vmem:[%s2858_s22 + $0x218] sm:$0xff] %vm2062_vm0, %v1045_v0  ;;  %2130 = vst.msk [vmem:[%s2858_s22 + $0x210] sm:$0xff] %vm2062_vm0, %v1043_v1 }
 0x128   : > { %1160 = vrot.lane.b32.xlu1 %v267_v62, %s2642_s19  ;;  %1158 = vrot.lane.b32.xlu0 %v266_v63, %s2642_s19  ;;  %v299_v62 = vld [vmem:[%s2731_s20 + $0x4ea] sm:$0xff]  ;;  %v298_v63 = vld [vmem:[%s2731_s20 + $0x4e2] sm:$0xff] }
 0x12a   : > { %v1049_v4 = vpop.permute.xlu1 %1048  ;;  %v1047_v5 = vpop.permute.xlu0 %1046 }
 0x12b   : > { %2133 = vst.msk [vmem:[%s2858_s22 + $0x228] sm:$0xff] %vm2062_vm0, %v1049_v4  ;;  %2132 = vst.msk [vmem:[%s2858_s22 + $0x220] sm:$0xff] %vm2062_vm0, %v1047_v5 }
 0x12c   : > { %1164 = vrot.lane.b32.xlu1 %v269_v2, %s2642_s19  ;;  %1162 = vrot.lane.b32.xlu0 %v268_v3, %s2642_s19  ;;  %v301_v2 = vld [vmem:[%s2731_s20 + $0x4fa] sm:$0xff]  ;;  %v300_v3 = vld [vmem:[%s2731_s20 + $0x4f2] sm:$0xff] }
 0x12e   : > { %v1053_v8 = vpop.permute.xlu1 %1052  ;;  %v1051_v9 = vpop.permute.xlu0 %1050 }
 0x12f   : > { %2135 = vst.msk [vmem:[%s2858_s22 + $0x238] sm:$0xf] %vm2074_vm1, %v1053_v8 }
 0x130   : > { %2134 = vst.msk [vmem:[%s2858_s22 + $0x230] sm:$0xff] %vm2062_vm0, %v1051_v9  ;;  %1168 = vrot.lane.b32.xlu1 %v271_v6, %s2642_s19  ;;  %1166 = vrot.lane.b32.xlu0 %v270_v7, %s2642_s19  ;;  %v303_v6 = vld [vmem:[%s2731_s20 + $0x50a] sm:$0xff] }
 0x131   : > { %v302_v7 = vld [vmem:[%s2731_s20 + $0x502] sm:$0xff] }
 0x132   : > { %v1057_v12 = vpop.permute.xlu1 %1056  ;;  %v1055_v13 = vpop.permute.xlu0 %1054 }
 0x133   : > { %2137 = vst.msk [vmem:[%s2858_s22 + $0x248] sm:$0xff] %vm2062_vm0, %v1057_v12  ;;  %2136 = vst.msk [vmem:[%s2858_s22 + $0x240] sm:$0xff] %vm2062_vm0, %v1055_v13 }
 0x134   : > { %1172 = vrot.lane.b32.xlu1 %v273_v10, %s2642_s19  ;;  %1170 = vrot.lane.b32.xlu0 %v272_v11, %s2642_s19  ;;  %v305_v10 = vld [vmem:[%s2731_s20 + $0x51a] sm:$0xff]  ;;  %v304_v11 = vld [vmem:[%s2731_s20 + $0x512] sm:$0xff] }
 0x136   : > { %v1061_v16 = vpop.permute.xlu1 %1060  ;;  %v1059_v17 = vpop.permute.xlu0 %1058 }
 0x137   : > { %2139 = vst.msk [vmem:[%s2858_s22 + $0x258] sm:$0xff] %vm2062_vm0, %v1061_v16  ;;  %2138 = vst.msk [vmem:[%s2858_s22 + $0x250] sm:$0xff] %vm2062_vm0, %v1059_v17 }
 0x138   : > { %1176 = vrot.lane.b32.xlu1 %v275_v14, %s2642_s19  ;;  %1174 = vrot.lane.b32.xlu0 %v274_v15, %s2642_s19  ;;  %v307_v14 = vld [vmem:[%s2731_s20 + $0x52a] sm:$0xff]  ;;  %v306_v15 = vld [vmem:[%s2731_s20 + $0x522] sm:$0xff] }
 0x13a   : > { %v1065_v20 = vpop.permute.xlu1 %1064  ;;  %v1063_v21 = vpop.permute.xlu0 %1062 }
 0x13b   : > { %2141 = vst.msk [vmem:[%s2858_s22 + $0x268] sm:$0xff] %vm2062_vm0, %v1065_v20  ;;  %2140 = vst.msk [vmem:[%s2858_s22 + $0x260] sm:$0xff] %vm2062_vm0, %v1063_v21 }
 0x13c   : > { %1180 = vrot.lane.b32.xlu1 %v277_v18, %s2642_s19  ;;  %1178 = vrot.lane.b32.xlu0 %v276_v19, %s2642_s19  ;;  %v309_v18 = vld [vmem:[%s2731_s20 + $0x53a] sm:$0xf]  ;;  %v308_v19 = vld [vmem:[%s2731_s20 + $0x532] sm:$0xff] }
 0x13e   : > { %v1069_v24 = vpop.permute.xlu1 %1068  ;;  %v1067_v25 = vpop.permute.xlu0 %1066 }
 0x13f   : > { %2143 = vst.msk [vmem:[%s2858_s22 + $0x278] sm:$0xff] %vm2062_vm0, %v1069_v24  ;;  %2142 = vst.msk [vmem:[%s2858_s22 + $0x270] sm:$0xff] %vm2062_vm0, %v1067_v25 }
 0x140   : > { %1184 = vrot.lane.b32.xlu1 %v279_v22, %s2642_s19  ;;  %1182 = vrot.lane.b32.xlu0 %v278_v23, %s2642_s19  ;;  %v311_v22 = vld [vmem:[%s2731_s20 + $0x54a] sm:$0xff]  ;;  %v310_v23 = vld [vmem:[%s2731_s20 + $0x542] sm:$0xff] }
 0x142   : > { %v1073_v28 = vpop.permute.xlu1 %1072  ;;  %v1071_v29 = vpop.permute.xlu0 %1070 }
 0x143   : > { %2145 = vst.msk [vmem:[%s2858_s22 + $0x288] sm:$0xff] %vm2062_vm0, %v1073_v28  ;;  %2144 = vst.msk [vmem:[%s2858_s22 + $0x280] sm:$0xff] %vm2062_vm0, %v1071_v29 }
 0x144   : > { %1188 = vrot.lane.b32.xlu1 %v281_v26, %s2642_s19  ;;  %1186 = vrot.lane.b32.xlu0 %v280_v27, %s2642_s19  ;;  %v313_v26 = vld [vmem:[%s2731_s20 + $0x55a] sm:$0xff]  ;;  %v312_v27 = vld [vmem:[%s2731_s20 + $0x552] sm:$0xff] }
 0x146   : > { %v1077_v32 = vpop.permute.xlu1 %1076  ;;  %v1075_v33 = vpop.permute.xlu0 %1074 }
 0x147   : > { %2147 = vst.msk [vmem:[%s2858_s22 + $0x298] sm:$0xf] %vm2074_vm1, %v1077_v32 }
 0x148   : > { %2146 = vst.msk [vmem:[%s2858_s22 + $0x290] sm:$0xff] %vm2062_vm0, %v1075_v33  ;;  %1192 = vrot.lane.b32.xlu1 %v283_v30, %s2642_s19  ;;  %1190 = vrot.lane.b32.xlu0 %v282_v31, %s2642_s19  ;;  %v315_v30 = vld [vmem:[%s2731_s20 + $0x56a] sm:$0xff] }
 0x149   : > { %v314_v31 = vld [vmem:[%s2731_s20 + $0x562] sm:$0xff] }
 0x14a   : > { %v1081_v36 = vpop.permute.xlu1 %1080  ;;  %v1079_v37 = vpop.permute.xlu0 %1078 }
 0x14b   : > { %2149 = vst.msk [vmem:[%s2858_s22 + $0x2a8] sm:$0xff] %vm2062_vm0, %v1081_v36  ;;  %2148 = vst.msk [vmem:[%s2858_s22 + $0x2a0] sm:$0xff] %vm2062_vm0, %v1079_v37 }
 0x14c   : > { %1196 = vrot.lane.b32.xlu1 %v285_v34, %s2642_s19  ;;  %1194 = vrot.lane.b32.xlu0 %v284_v35, %s2642_s19  ;;  %v317_v34 = vld [vmem:[%s2731_s20 + $0x57a] sm:$0xff]  ;;  %v316_v35 = vld [vmem:[%s2731_s20 + $0x572] sm:$0xff] }
 0x14e   : > { %v1085_v40 = vpop.permute.xlu1 %1084  ;;  %v1083_v41 = vpop.permute.xlu0 %1082 }
 0x14f   : > { %2151 = vst.msk [vmem:[%s2858_s22 + $0x2b8] sm:$0xff] %vm2062_vm0, %v1085_v40  ;;  %2150 = vst.msk [vmem:[%s2858_s22 + $0x2b0] sm:$0xff] %vm2062_vm0, %v1083_v41 }
 0x150   : > { %1200 = vrot.lane.b32.xlu1 %v287_v38, %s2642_s19  ;;  %1198 = vrot.lane.b32.xlu0 %v286_v39, %s2642_s19  ;;  %v319_v38 = vld [vmem:[%s2731_s20 + $0x58a] sm:$0xff]  ;;  %v318_v39 = vld [vmem:[%s2731_s20 + $0x582] sm:$0xff] }
 0x152   : > { %v1089_v44 = vpop.permute.xlu1 %1088  ;;  %v1087_v45 = vpop.permute.xlu0 %1086 }
 0x153   : > { %2153 = vst.msk [vmem:[%s2858_s22 + $0x2c8] sm:$0xff] %vm2062_vm0, %v1089_v44  ;;  %2152 = vst.msk [vmem:[%s2858_s22 + $0x2c0] sm:$0xff] %vm2062_vm0, %v1087_v45 }
 0x154   : > { %1204 = vrot.lane.b32.xlu1 %v289_v42, %s2642_s19  ;;  %1202 = vrot.lane.b32.xlu0 %v288_v43, %s2642_s19  ;;  %v321_v42 = vld [vmem:[%s2731_s20 + $0x59a] sm:$0xf]  ;;  %v320_v43 = vld [vmem:[%s2731_s20 + $0x592] sm:$0xff] }
 0x156   : > { %v1093_v48 = vpop.permute.xlu1 %1092  ;;  %v1091_v49 = vpop.permute.xlu0 %1090 }
 0x157   : > { %2155 = vst.msk [vmem:[%s2858_s22 + $0x2d8] sm:$0xff] %vm2062_vm0, %v1093_v48  ;;  %2154 = vst.msk [vmem:[%s2858_s22 + $0x2d0] sm:$0xff] %vm2062_vm0, %v1091_v49 }
 0x158   : > { %1208 = vrot.lane.b32.xlu1 %v291_v46, %s2642_s19  ;;  %1206 = vrot.lane.b32.xlu0 %v290_v47, %s2642_s19  ;;  %v323_v46 = vld [vmem:[%s2731_s20 + $0x5aa] sm:$0xff]  ;;  %v322_v47 = vld [vmem:[%s2731_s20 + $0x5a2] sm:$0xff] }
 0x15a   : > { %v1097_v52 = vpop.permute.xlu1 %1096  ;;  %v1095_v53 = vpop.permute.xlu0 %1094 }
 0x15b   : > { %2157 = vst.msk [vmem:[%s2858_s22 + $0x2e8] sm:$0xff] %vm2062_vm0, %v1097_v52  ;;  %2156 = vst.msk [vmem:[%s2858_s22 + $0x2e0] sm:$0xff] %vm2062_vm0, %v1095_v53 }
 0x15c   : > { %1212 = vrot.lane.b32.xlu1 %v293_v50, %s2642_s19  ;;  %1210 = vrot.lane.b32.xlu0 %v292_v51, %s2642_s19  ;;  %v325_v50 = vld [vmem:[%s2731_s20 + $0x5ba] sm:$0xff]  ;;  %v324_v51 = vld [vmem:[%s2731_s20 + $0x5b2] sm:$0xff] }
 0x15e   : > { %v1101_v56 = vpop.permute.xlu1 %1100  ;;  %v1099_v57 = vpop.permute.xlu0 %1098 }
 0x15f   : > { %2159 = vst.msk [vmem:[%s2858_s22 + $0x2f8] sm:$0xf] %vm2074_vm1, %v1101_v56 }
 0x160   : > { %2158 = vst.msk [vmem:[%s2858_s22 + $0x2f0] sm:$0xff] %vm2062_vm0, %v1099_v57  ;;  %1216 = vrot.lane.b32.xlu1 %v295_v54, %s2642_s19  ;;  %1214 = vrot.lane.b32.xlu0 %v294_v55, %s2642_s19  ;;  %v327_v54 = vld [vmem:[%s2731_s20 + $0x5ca] sm:$0xff] }
 0x161   : > { %v326_v55 = vld [vmem:[%s2731_s20 + $0x5c2] sm:$0xff] }
 0x162   : > { %v1105_v60 = vpop.permute.xlu1 %1104  ;;  %v1103_v61 = vpop.permute.xlu0 %1102 }
 0x163   : > { %2161 = vst.msk [vmem:[%s2858_s22 + $0x308] sm:$0xff] %vm2062_vm0, %v1105_v60  ;;  %2160 = vst.msk [vmem:[%s2858_s22 + $0x300] sm:$0xff] %vm2062_vm0, %v1103_v61 }
 0x164   : > { %1220 = vrot.lane.b32.xlu1 %v297_v58, %s2642_s19  ;;  %1218 = vrot.lane.b32.xlu0 %v296_v59, %s2642_s19  ;;  %v329_v58 = vld [vmem:[%s2731_s20 + $0x5da] sm:$0xff]  ;;  %v328_v59 = vld [vmem:[%s2731_s20 + $0x5d2] sm:$0xff] }
 0x166   : > { %v1109_v0 = vpop.permute.xlu1 %1108  ;;  %v1107_v1 = vpop.permute.xlu0 %1106 }
 0x167   : > { %2163 = vst.msk [vmem:[%s2858_s22 + $0x318] sm:$0xff] %vm2062_vm0, %v1109_v0  ;;  %2162 = vst.msk [vmem:[%s2858_s22 + $0x310] sm:$0xff] %vm2062_vm0, %v1107_v1 }
 0x168   : > { %1224 = vrot.lane.b32.xlu1 %v299_v62, %s2642_s19  ;;  %1222 = vrot.lane.b32.xlu0 %v298_v63, %s2642_s19  ;;  %v331_v62 = vld [vmem:[%s2731_s20 + $0x5ea] sm:$0xff]  ;;  %v330_v63 = vld [vmem:[%s2731_s20 + $0x5e2] sm:$0xff] }
 0x16a   : > { %v1113_v4 = vpop.permute.xlu1 %1112  ;;  %v1111_v5 = vpop.permute.xlu0 %1110 }
 0x16b   : > { %2165 = vst.msk [vmem:[%s2858_s22 + $0x328] sm:$0xff] %vm2062_vm0, %v1113_v4  ;;  %2164 = vst.msk [vmem:[%s2858_s22 + $0x320] sm:$0xff] %vm2062_vm0, %v1111_v5 }
 0x16c   : > { %1228 = vrot.lane.b32.xlu1 %v301_v2, %s2642_s19  ;;  %1226 = vrot.lane.b32.xlu0 %v300_v3, %s2642_s19  ;;  %v333_v2 = vld [vmem:[%s2731_s20 + $0x5fa] sm:$0xf]  ;;  %v332_v3 = vld [vmem:[%s2731_s20 + $0x5f2] sm:$0xff] }
 0x16e   : > { %v1117_v8 = vpop.permute.xlu1 %1116  ;;  %v1115_v9 = vpop.permute.xlu0 %1114 }
 0x16f   : > { %2167 = vst.msk [vmem:[%s2858_s22 + $0x338] sm:$0xff] %vm2062_vm0, %v1117_v8  ;;  %2166 = vst.msk [vmem:[%s2858_s22 + $0x330] sm:$0xff] %vm2062_vm0, %v1115_v9 }
 0x170   : > { %1232 = vrot.lane.b32.xlu1 %v303_v6, %s2642_s19  ;;  %1230 = vrot.lane.b32.xlu0 %v302_v7, %s2642_s19  ;;  %v335_v6 = vld [vmem:[%s2731_s20 + $0x60a] sm:$0xff]  ;;  %v334_v7 = vld [vmem:[%s2731_s20 + $0x602] sm:$0xff] }
 0x172   : > { %v1121_v12 = vpop.permute.xlu1 %1120  ;;  %v1119_v13 = vpop.permute.xlu0 %1118 }
 0x173   : > { %2169 = vst.msk [vmem:[%s2858_s22 + $0x348] sm:$0xff] %vm2062_vm0, %v1121_v12  ;;  %2168 = vst.msk [vmem:[%s2858_s22 + $0x340] sm:$0xff] %vm2062_vm0, %v1119_v13 }
 0x174   : > { %1236 = vrot.lane.b32.xlu1 %v305_v10, %s2642_s19  ;;  %1234 = vrot.lane.b32.xlu0 %v304_v11, %s2642_s19  ;;  %v337_v10 = vld [vmem:[%s2731_s20 + $0x61a] sm:$0xff]  ;;  %v336_v11 = vld [vmem:[%s2731_s20 + $0x612] sm:$0xff] }
 0x176   : > { %v1125_v16 = vpop.permute.xlu1 %1124  ;;  %v1123_v17 = vpop.permute.xlu0 %1122 }
 0x177   : > { %2171 = vst.msk [vmem:[%s2858_s22 + $0x358] sm:$0xf] %vm2074_vm1, %v1125_v16 }
 0x178   : > { %2170 = vst.msk [vmem:[%s2858_s22 + $0x350] sm:$0xff] %vm2062_vm0, %v1123_v17  ;;  %1240 = vrot.lane.b32.xlu1 %v307_v14, %s2642_s19  ;;  %1238 = vrot.lane.b32.xlu0 %v306_v15, %s2642_s19  ;;  %v339_v14 = vld [vmem:[%s2731_s20 + $0x62a] sm:$0xff] }
 0x179   : > { %v338_v15 = vld [vmem:[%s2731_s20 + $0x622] sm:$0xff] }
 0x17a   : > { %v1129_v20 = vpop.permute.xlu1 %1128  ;;  %v1127_v21 = vpop.permute.xlu0 %1126 }
 0x17b   : > { %2173 = vst.msk [vmem:[%s2858_s22 + $0x368] sm:$0xff] %vm2062_vm0, %v1129_v20  ;;  %2172 = vst.msk [vmem:[%s2858_s22 + $0x360] sm:$0xff] %vm2062_vm0, %v1127_v21 }
 0x17c   : > { %1244 = vrot.lane.b32.xlu1 %v309_v18, %s2642_s19  ;;  %1242 = vrot.lane.b32.xlu0 %v308_v19, %s2642_s19  ;;  %v341_v18 = vld [vmem:[%s2731_s20 + $0x63a] sm:$0xff]  ;;  %v340_v19 = vld [vmem:[%s2731_s20 + $0x632] sm:$0xff] }
 0x17e   : > { %v1133_v24 = vpop.permute.xlu1 %1132  ;;  %v1131_v25 = vpop.permute.xlu0 %1130 }
 0x17f   : > { %2175 = vst.msk [vmem:[%s2858_s22 + $0x378] sm:$0xff] %vm2062_vm0, %v1133_v24  ;;  %2174 = vst.msk [vmem:[%s2858_s22 + $0x370] sm:$0xff] %vm2062_vm0, %v1131_v25 }
 0x180   : > { %1248 = vrot.lane.b32.xlu1 %v311_v22, %s2642_s19  ;;  %1246 = vrot.lane.b32.xlu0 %v310_v23, %s2642_s19  ;;  %v343_v22 = vld [vmem:[%s2731_s20 + $0x64a] sm:$0xff]  ;;  %v342_v23 = vld [vmem:[%s2731_s20 + $0x642] sm:$0xff] }
 0x182   : > { %v1137_v28 = vpop.permute.xlu1 %1136  ;;  %v1135_v29 = vpop.permute.xlu0 %1134 }
 0x183   : > { %2177 = vst.msk [vmem:[%s2858_s22 + $0x388] sm:$0xff] %vm2062_vm0, %v1137_v28  ;;  %2176 = vst.msk [vmem:[%s2858_s22 + $0x380] sm:$0xff] %vm2062_vm0, %v1135_v29 }
 0x184   : > { %1252 = vrot.lane.b32.xlu1 %v313_v26, %s2642_s19  ;;  %1250 = vrot.lane.b32.xlu0 %v312_v27, %s2642_s19  ;;  %v345_v26 = vld [vmem:[%s2731_s20 + $0x65a] sm:$0xf]  ;;  %v344_v27 = vld [vmem:[%s2731_s20 + $0x652] sm:$0xff] }
 0x186   : > { %v1141_v32 = vpop.permute.xlu1 %1140  ;;  %v1139_v33 = vpop.permute.xlu0 %1138 }
 0x187   : > { %2179 = vst.msk [vmem:[%s2858_s22 + $0x398] sm:$0xff] %vm2062_vm0, %v1141_v32  ;;  %2178 = vst.msk [vmem:[%s2858_s22 + $0x390] sm:$0xff] %vm2062_vm0, %v1139_v33 }
 0x188   : > { %1256 = vrot.lane.b32.xlu1 %v315_v30, %s2642_s19  ;;  %1254 = vrot.lane.b32.xlu0 %v314_v31, %s2642_s19  ;;  %v347_v30 = vld [vmem:[%s2731_s20 + $0x66a] sm:$0xff]  ;;  %v346_v31 = vld [vmem:[%s2731_s20 + $0x662] sm:$0xff] }
 0x18a   : > { %v1145_v36 = vpop.permute.xlu1 %1144  ;;  %v1143_v37 = vpop.permute.xlu0 %1142 }
 0x18b   : > { %2181 = vst.msk [vmem:[%s2858_s22 + $0x3a8] sm:$0xff] %vm2062_vm0, %v1145_v36  ;;  %2180 = vst.msk [vmem:[%s2858_s22 + $0x3a0] sm:$0xff] %vm2062_vm0, %v1143_v37 }
 0x18c   : > { %1260 = vrot.lane.b32.xlu1 %v317_v34, %s2642_s19  ;;  %1258 = vrot.lane.b32.xlu0 %v316_v35, %s2642_s19  ;;  %v349_v34 = vld [vmem:[%s2731_s20 + $0x67a] sm:$0xff]  ;;  %v348_v35 = vld [vmem:[%s2731_s20 + $0x672] sm:$0xff] }
 0x18e   : > { %v1149_v40 = vpop.permute.xlu1 %1148  ;;  %v1147_v41 = vpop.permute.xlu0 %1146 }
 0x18f   : > { %2183 = vst.msk [vmem:[%s2858_s22 + $0x3b8] sm:$0xf] %vm2074_vm1, %v1149_v40 }
 0x190   : > { %2182 = vst.msk [vmem:[%s2858_s22 + $0x3b0] sm:$0xff] %vm2062_vm0, %v1147_v41  ;;  %1264 = vrot.lane.b32.xlu1 %v319_v38, %s2642_s19  ;;  %1262 = vrot.lane.b32.xlu0 %v318_v39, %s2642_s19  ;;  %v351_v38 = vld [vmem:[%s2731_s20 + $0x68a] sm:$0xff] }
 0x191   : > { %v350_v39 = vld [vmem:[%s2731_s20 + $0x682] sm:$0xff] }
 0x192   : > { %v1153_v44 = vpop.permute.xlu1 %1152  ;;  %v1151_v45 = vpop.permute.xlu0 %1150 }
 0x193   : > { %2185 = vst.msk [vmem:[%s2858_s22 + $0x3c8] sm:$0xff] %vm2062_vm0, %v1153_v44  ;;  %2184 = vst.msk [vmem:[%s2858_s22 + $0x3c0] sm:$0xff] %vm2062_vm0, %v1151_v45 }
 0x194   : > { %1268 = vrot.lane.b32.xlu1 %v321_v42, %s2642_s19  ;;  %1266 = vrot.lane.b32.xlu0 %v320_v43, %s2642_s19  ;;  %v353_v42 = vld [vmem:[%s2731_s20 + $0x69a] sm:$0xff]  ;;  %v352_v43 = vld [vmem:[%s2731_s20 + $0x692] sm:$0xff] }
 0x196   : > { %v1157_v48 = vpop.permute.xlu1 %1156  ;;  %v1155_v49 = vpop.permute.xlu0 %1154 }
 0x197   : > { %2187 = vst.msk [vmem:[%s2858_s22 + $0x3d8] sm:$0xff] %vm2062_vm0, %v1157_v48  ;;  %2186 = vst.msk [vmem:[%s2858_s22 + $0x3d0] sm:$0xff] %vm2062_vm0, %v1155_v49 }
 0x198   : > { %1272 = vrot.lane.b32.xlu1 %v323_v46, %s2642_s19  ;;  %1270 = vrot.lane.b32.xlu0 %v322_v47, %s2642_s19  ;;  %v355_v46 = vld [vmem:[%s2731_s20 + $0x6aa] sm:$0xff]  ;;  %v354_v47 = vld [vmem:[%s2731_s20 + $0x6a2] sm:$0xff] }
 0x19a   : > { %v1161_v52 = vpop.permute.xlu1 %1160  ;;  %v1159_v53 = vpop.permute.xlu0 %1158 }
 0x19b   : > { %2189 = vst.msk [vmem:[%s2858_s22 + $0x3e8] sm:$0xff] %vm2062_vm0, %v1161_v52  ;;  %2188 = vst.msk [vmem:[%s2858_s22 + $0x3e0] sm:$0xff] %vm2062_vm0, %v1159_v53 }
 0x19c   : > { %1276 = vrot.lane.b32.xlu1 %v325_v50, %s2642_s19  ;;  %1274 = vrot.lane.b32.xlu0 %v324_v51, %s2642_s19  ;;  %v357_v50 = vld [vmem:[%s2731_s20 + $0x6ba] sm:$0xf]  ;;  %v356_v51 = vld [vmem:[%s2731_s20 + $0x6b2] sm:$0xff] }
 0x19e   : > { %v1165_v56 = vpop.permute.xlu1 %1164  ;;  %v1163_v57 = vpop.permute.xlu0 %1162 }
 0x19f   : > { %2191 = vst.msk [vmem:[%s2858_s22 + $0x3f8] sm:$0xff] %vm2062_vm0, %v1165_v56  ;;  %2190 = vst.msk [vmem:[%s2858_s22 + $0x3f0] sm:$0xff] %vm2062_vm0, %v1163_v57 }
 0x1a0   : > { %1280 = vrot.lane.b32.xlu1 %v327_v54, %s2642_s19  ;;  %1278 = vrot.lane.b32.xlu0 %v326_v55, %s2642_s19  ;;  %v359_v54 = vld [vmem:[%s2731_s20 + $0x6ca] sm:$0xff]  ;;  %v358_v55 = vld [vmem:[%s2731_s20 + $0x6c2] sm:$0xff] }
 0x1a2   : > { %v1169_v60 = vpop.permute.xlu1 %1168  ;;  %v1167_v61 = vpop.permute.xlu0 %1166 }
 0x1a3   : > { %2193 = vst.msk [vmem:[%s2858_s22 + $0x408] sm:$0xff] %vm2062_vm0, %v1169_v60  ;;  %2192 = vst.msk [vmem:[%s2858_s22 + $0x400] sm:$0xff] %vm2062_vm0, %v1167_v61 }
 0x1a4   : > { %1284 = vrot.lane.b32.xlu1 %v329_v58, %s2642_s19  ;;  %1282 = vrot.lane.b32.xlu0 %v328_v59, %s2642_s19  ;;  %v361_v58 = vld [vmem:[%s2731_s20 + $0x6da] sm:$0xff]  ;;  %v360_v59 = vld [vmem:[%s2731_s20 + $0x6d2] sm:$0xff] }
 0x1a6   : > { %v1173_v0 = vpop.permute.xlu1 %1172  ;;  %v1171_v1 = vpop.permute.xlu0 %1170 }
 0x1a7   : > { %2195 = vst.msk [vmem:[%s2858_s22 + $0x418] sm:$0xf] %vm2074_vm1, %v1173_v0 }
 0x1a8   : > { %2194 = vst.msk [vmem:[%s2858_s22 + $0x410] sm:$0xff] %vm2062_vm0, %v1171_v1  ;;  %1288 = vrot.lane.b32.xlu1 %v331_v62, %s2642_s19  ;;  %1286 = vrot.lane.b32.xlu0 %v330_v63, %s2642_s19  ;;  %v363_v62 = vld [vmem:[%s2731_s20 + $0x6ea] sm:$0xff] }
 0x1a9   : > { %v362_v63 = vld [vmem:[%s2731_s20 + $0x6e2] sm:$0xff] }
 0x1aa   : > { %v1177_v4 = vpop.permute.xlu1 %1176  ;;  %v1175_v5 = vpop.permute.xlu0 %1174 }
 0x1ab   : > { %2197 = vst.msk [vmem:[%s2858_s22 + $0x428] sm:$0xff] %vm2062_vm0, %v1177_v4  ;;  %2196 = vst.msk [vmem:[%s2858_s22 + $0x420] sm:$0xff] %vm2062_vm0, %v1175_v5 }
 0x1ac   : > { %1292 = vrot.lane.b32.xlu1 %v333_v2, %s2642_s19  ;;  %1290 = vrot.lane.b32.xlu0 %v332_v3, %s2642_s19  ;;  %v365_v2 = vld [vmem:[%s2731_s20 + $0x6fa] sm:$0xff]  ;;  %v364_v3 = vld [vmem:[%s2731_s20 + $0x6f2] sm:$0xff] }
 0x1ae   : > { %v1181_v8 = vpop.permute.xlu1 %1180  ;;  %v1179_v9 = vpop.permute.xlu0 %1178 }
 0x1af   : > { %2199 = vst.msk [vmem:[%s2858_s22 + $0x438] sm:$0xff] %vm2062_vm0, %v1181_v8  ;;  %2198 = vst.msk [vmem:[%s2858_s22 + $0x430] sm:$0xff] %vm2062_vm0, %v1179_v9 }
 0x1b0   : > { %1296 = vrot.lane.b32.xlu1 %v335_v6, %s2642_s19  ;;  %1294 = vrot.lane.b32.xlu0 %v334_v7, %s2642_s19  ;;  %v367_v6 = vld [vmem:[%s2731_s20 + $0x70a] sm:$0xff]  ;;  %v366_v7 = vld [vmem:[%s2731_s20 + $0x702] sm:$0xff] }
 0x1b2   : > { %v1185_v12 = vpop.permute.xlu1 %1184  ;;  %v1183_v13 = vpop.permute.xlu0 %1182 }
 0x1b3   : > { %2201 = vst.msk [vmem:[%s2858_s22 + $0x448] sm:$0xff] %vm2062_vm0, %v1185_v12  ;;  %2200 = vst.msk [vmem:[%s2858_s22 + $0x440] sm:$0xff] %vm2062_vm0, %v1183_v13 }
 0x1b4   : > { %1300 = vrot.lane.b32.xlu1 %v337_v10, %s2642_s19  ;;  %1298 = vrot.lane.b32.xlu0 %v336_v11, %s2642_s19  ;;  %v369_v10 = vld [vmem:[%s2731_s20 + $0x71a] sm:$0xf]  ;;  %v368_v11 = vld [vmem:[%s2731_s20 + $0x712] sm:$0xff] }
 0x1b6   : > { %v1189_v16 = vpop.permute.xlu1 %1188  ;;  %v1187_v17 = vpop.permute.xlu0 %1186 }
 0x1b7   : > { %2203 = vst.msk [vmem:[%s2858_s22 + $0x458] sm:$0xff] %vm2062_vm0, %v1189_v16  ;;  %2202 = vst.msk [vmem:[%s2858_s22 + $0x450] sm:$0xff] %vm2062_vm0, %v1187_v17 }
 0x1b8   : > { %1304 = vrot.lane.b32.xlu1 %v339_v14, %s2642_s19  ;;  %1302 = vrot.lane.b32.xlu0 %v338_v15, %s2642_s19  ;;  %v371_v14 = vld [vmem:[%s2731_s20 + $0x72a] sm:$0xff]  ;;  %v370_v15 = vld [vmem:[%s2731_s20 + $0x722] sm:$0xff] }
 0x1ba   : > { %v1193_v20 = vpop.permute.xlu1 %1192  ;;  %v1191_v21 = vpop.permute.xlu0 %1190 }
 0x1bb   : > { %2205 = vst.msk [vmem:[%s2858_s22 + $0x468] sm:$0xff] %vm2062_vm0, %v1193_v20  ;;  %2204 = vst.msk [vmem:[%s2858_s22 + $0x460] sm:$0xff] %vm2062_vm0, %v1191_v21 }
 0x1bc   : > { %1308 = vrot.lane.b32.xlu1 %v341_v18, %s2642_s19  ;;  %1306 = vrot.lane.b32.xlu0 %v340_v19, %s2642_s19  ;;  %v373_v18 = vld [vmem:[%s2731_s20 + $0x73a] sm:$0xff]  ;;  %v372_v19 = vld [vmem:[%s2731_s20 + $0x732] sm:$0xff] }
 0x1be   : > { %v1197_v24 = vpop.permute.xlu1 %1196  ;;  %v1195_v25 = vpop.permute.xlu0 %1194 }
 0x1bf   : > { %2207 = vst.msk [vmem:[%s2858_s22 + $0x478] sm:$0xf] %vm2074_vm1, %v1197_v24 }
 0x1c0   : > { %2206 = vst.msk [vmem:[%s2858_s22 + $0x470] sm:$0xff] %vm2062_vm0, %v1195_v25  ;;  %1312 = vrot.lane.b32.xlu1 %v343_v22, %s2642_s19  ;;  %1310 = vrot.lane.b32.xlu0 %v342_v23, %s2642_s19  ;;  %v375_v22 = vld [vmem:[%s2731_s20 + $0x74a] sm:$0xff] }
 0x1c1   : > { %v374_v23 = vld [vmem:[%s2731_s20 + $0x742] sm:$0xff] }
 0x1c2   : > { %v1201_v28 = vpop.permute.xlu1 %1200  ;;  %v1199_v29 = vpop.permute.xlu0 %1198 }
 0x1c3   : > { %2209 = vst.msk [vmem:[%s2858_s22 + $0x488] sm:$0xff] %vm2062_vm0, %v1201_v28  ;;  %2208 = vst.msk [vmem:[%s2858_s22 + $0x480] sm:$0xff] %vm2062_vm0, %v1199_v29 }
 0x1c4   : > { %1316 = vrot.lane.b32.xlu1 %v345_v26, %s2642_s19  ;;  %1314 = vrot.lane.b32.xlu0 %v344_v27, %s2642_s19  ;;  %v377_v26 = vld [vmem:[%s2731_s20 + $0x75a] sm:$0xff]  ;;  %v376_v27 = vld [vmem:[%s2731_s20 + $0x752] sm:$0xff] }
 0x1c6   : > { %v1205_v32 = vpop.permute.xlu1 %1204  ;;  %v1203_v33 = vpop.permute.xlu0 %1202 }
 0x1c7   : > { %2211 = vst.msk [vmem:[%s2858_s22 + $0x498] sm:$0xff] %vm2062_vm0, %v1205_v32  ;;  %2210 = vst.msk [vmem:[%s2858_s22 + $0x490] sm:$0xff] %vm2062_vm0, %v1203_v33 }
 0x1c8   : > { %1320 = vrot.lane.b32.xlu1 %v347_v30, %s2642_s19  ;;  %1318 = vrot.lane.b32.xlu0 %v346_v31, %s2642_s19  ;;  %v379_v30 = vld [vmem:[%s2731_s20 + $0x76a] sm:$0xff]  ;;  %v378_v31 = vld [vmem:[%s2731_s20 + $0x762] sm:$0xff] }
 0x1ca   : > { %v1209_v36 = vpop.permute.xlu1 %1208  ;;  %v1207_v37 = vpop.permute.xlu0 %1206 }
 0x1cb   : > { %2213 = vst.msk [vmem:[%s2858_s22 + $0x4a8] sm:$0xff] %vm2062_vm0, %v1209_v36  ;;  %2212 = vst.msk [vmem:[%s2858_s22 + $0x4a0] sm:$0xff] %vm2062_vm0, %v1207_v37 }
 0x1cc   : > { %1324 = vrot.lane.b32.xlu1 %v349_v34, %s2642_s19  ;;  %1322 = vrot.lane.b32.xlu0 %v348_v35, %s2642_s19  ;;  %v381_v34 = vld [vmem:[%s2731_s20 + $0x77a] sm:$0xf]  ;;  %v380_v35 = vld [vmem:[%s2731_s20 + $0x772] sm:$0xff] }
 0x1ce   : > { %v1213_v40 = vpop.permute.xlu1 %1212  ;;  %v1211_v41 = vpop.permute.xlu0 %1210 }
 0x1cf   : > { %2215 = vst.msk [vmem:[%s2858_s22 + $0x4b8] sm:$0xff] %vm2062_vm0, %v1213_v40  ;;  %2214 = vst.msk [vmem:[%s2858_s22 + $0x4b0] sm:$0xff] %vm2062_vm0, %v1211_v41 }
 0x1d0   : > { %1328 = vrot.lane.b32.xlu1 %v351_v38, %s2642_s19  ;;  %1326 = vrot.lane.b32.xlu0 %v350_v39, %s2642_s19  ;;  %v383_v38 = vld [vmem:[%s2731_s20 + $0x78a] sm:$0xff]  ;;  %v382_v39 = vld [vmem:[%s2731_s20 + $0x782] sm:$0xff] }
 0x1d2   : > { %v1217_v44 = vpop.permute.xlu1 %1216  ;;  %v1215_v45 = vpop.permute.xlu0 %1214 }
 0x1d3   : > { %2217 = vst.msk [vmem:[%s2858_s22 + $0x4c8] sm:$0xff] %vm2062_vm0, %v1217_v44  ;;  %2216 = vst.msk [vmem:[%s2858_s22 + $0x4c0] sm:$0xff] %vm2062_vm0, %v1215_v45 }
 0x1d4   : > { %1332 = vrot.lane.b32.xlu1 %v353_v42, %s2642_s19  ;;  %1330 = vrot.lane.b32.xlu0 %v352_v43, %s2642_s19  ;;  %v385_v42 = vld [vmem:[%s2731_s20 + $0x79a] sm:$0xff]  ;;  %v384_v43 = vld [vmem:[%s2731_s20 + $0x792] sm:$0xff] }
 0x1d6   : > { %v1221_v48 = vpop.permute.xlu1 %1220  ;;  %v1219_v49 = vpop.permute.xlu0 %1218 }
 0x1d7   : > { %2219 = vst.msk [vmem:[%s2858_s22 + $0x4d8] sm:$0xf] %vm2074_vm1, %v1221_v48 }
 0x1d8   : > { %2218 = vst.msk [vmem:[%s2858_s22 + $0x4d0] sm:$0xff] %vm2062_vm0, %v1219_v49  ;;  %1336 = vrot.lane.b32.xlu1 %v355_v46, %s2642_s19  ;;  %1334 = vrot.lane.b32.xlu0 %v354_v47, %s2642_s19  ;;  %v387_v46 = vld [vmem:[%s2731_s20 + $0x7aa] sm:$0xff] }
 0x1d9   : > { %v386_v47 = vld [vmem:[%s2731_s20 + $0x7a2] sm:$0xff] }
 0x1da   : > { %v1225_v52 = vpop.permute.xlu1 %1224  ;;  %v1223_v53 = vpop.permute.xlu0 %1222 }
 0x1db   : > { %2221 = vst.msk [vmem:[%s2858_s22 + $0x4e8] sm:$0xff] %vm2062_vm0, %v1225_v52  ;;  %2220 = vst.msk [vmem:[%s2858_s22 + $0x4e0] sm:$0xff] %vm2062_vm0, %v1223_v53 }
 0x1dc   : > { %1340 = vrot.lane.b32.xlu1 %v357_v50, %s2642_s19  ;;  %1338 = vrot.lane.b32.xlu0 %v356_v51, %s2642_s19  ;;  %v389_v50 = vld [vmem:[%s2731_s20 + $0x7ba] sm:$0xff]  ;;  %v388_v51 = vld [vmem:[%s2731_s20 + $0x7b2] sm:$0xff] }
 0x1de   : > { %v1229_v56 = vpop.permute.xlu1 %1228  ;;  %v1227_v57 = vpop.permute.xlu0 %1226 }
 0x1df   : > { %2223 = vst.msk [vmem:[%s2858_s22 + $0x4f8] sm:$0xff] %vm2062_vm0, %v1229_v56  ;;  %2222 = vst.msk [vmem:[%s2858_s22 + $0x4f0] sm:$0xff] %vm2062_vm0, %v1227_v57 }
 0x1e0   : > { %1344 = vrot.lane.b32.xlu1 %v359_v54, %s2642_s19  ;;  %1342 = vrot.lane.b32.xlu0 %v358_v55, %s2642_s19  ;;  %v391_v54 = vld [vmem:[%s2731_s20 + $0x7ca] sm:$0xff]  ;;  %v390_v55 = vld [vmem:[%s2731_s20 + $0x7c2] sm:$0xff] }
 0x1e2   : > { %v1233_v60 = vpop.permute.xlu1 %1232  ;;  %v1231_v61 = vpop.permute.xlu0 %1230 }
 0x1e3   : > { %2225 = vst.msk [vmem:[%s2858_s22 + $0x508] sm:$0xff] %vm2062_vm0, %v1233_v60  ;;  %2224 = vst.msk [vmem:[%s2858_s22 + $0x500] sm:$0xff] %vm2062_vm0, %v1231_v61 }
 0x1e4   : > { %1348 = vrot.lane.b32.xlu1 %v361_v58, %s2642_s19  ;;  %1346 = vrot.lane.b32.xlu0 %v360_v59, %s2642_s19  ;;  %v393_v58 = vld [vmem:[%s2731_s20 + $0x7da] sm:$0xf]  ;;  %v392_v59 = vld [vmem:[%s2731_s20 + $0x7d2] sm:$0xff] }
 0x1e6   : > { %v1237_v0 = vpop.permute.xlu1 %1236  ;;  %v1235_v1 = vpop.permute.xlu0 %1234 }
 0x1e7   : > { %2227 = vst.msk [vmem:[%s2858_s22 + $0x518] sm:$0xff] %vm2062_vm0, %v1237_v0  ;;  %2226 = vst.msk [vmem:[%s2858_s22 + $0x510] sm:$0xff] %vm2062_vm0, %v1235_v1 }
 0x1e8   : > { %1352 = vrot.lane.b32.xlu1 %v363_v62, %s2642_s19  ;;  %1350 = vrot.lane.b32.xlu0 %v362_v63, %s2642_s19  ;;  %v395_v62 = vld [vmem:[%s2731_s20 + $0x7ea] sm:$0xff]  ;;  %v394_v63 = vld [vmem:[%s2731_s20 + $0x7e2] sm:$0xff] }
 0x1ea   : > { %v1241_v4 = vpop.permute.xlu1 %1240  ;;  %v1239_v5 = vpop.permute.xlu0 %1238 }
 0x1eb   : > { %2229 = vst.msk [vmem:[%s2858_s22 + $0x528] sm:$0xff] %vm2062_vm0, %v1241_v4  ;;  %2228 = vst.msk [vmem:[%s2858_s22 + $0x520] sm:$0xff] %vm2062_vm0, %v1239_v5 }
 0x1ec   : > { %1356 = vrot.lane.b32.xlu1 %v365_v2, %s2642_s19  ;;  %1354 = vrot.lane.b32.xlu0 %v364_v3, %s2642_s19  ;;  %v397_v2 = vld [vmem:[%s2731_s20 + $0x7fa] sm:$0xff]  ;;  %v396_v3 = vld [vmem:[%s2731_s20 + $0x7f2] sm:$0xff] }
 0x1ee   : > { %v1245_v8 = vpop.permute.xlu1 %1244  ;;  %v1243_v9 = vpop.permute.xlu0 %1242 }
 0x1ef   : > { %2231 = vst.msk [vmem:[%s2858_s22 + $0x538] sm:$0xf] %vm2074_vm1, %v1245_v8 }
 0x1f0   : > { %2230 = vst.msk [vmem:[%s2858_s22 + $0x530] sm:$0xff] %vm2062_vm0, %v1243_v9  ;;  %1360 = vrot.lane.b32.xlu1 %v367_v6, %s2642_s19  ;;  %1358 = vrot.lane.b32.xlu0 %v366_v7, %s2642_s19  ;;  %v399_v6 = vld [vmem:[%s2731_s20 + $0x80a] sm:$0xff] }
 0x1f1   : > { %v398_v7 = vld [vmem:[%s2731_s20 + $0x802] sm:$0xff] }
 0x1f2   : > { %v1249_v12 = vpop.permute.xlu1 %1248  ;;  %v1247_v13 = vpop.permute.xlu0 %1246 }
 0x1f3   : > { %2233 = vst.msk [vmem:[%s2858_s22 + $0x548] sm:$0xff] %vm2062_vm0, %v1249_v12  ;;  %2232 = vst.msk [vmem:[%s2858_s22 + $0x540] sm:$0xff] %vm2062_vm0, %v1247_v13 }
 0x1f4   : > { %1364 = vrot.lane.b32.xlu1 %v369_v10, %s2642_s19  ;;  %1362 = vrot.lane.b32.xlu0 %v368_v11, %s2642_s19  ;;  %v401_v10 = vld [vmem:[%s2731_s20 + $0x81a] sm:$0xff]  ;;  %v400_v11 = vld [vmem:[%s2731_s20 + $0x812] sm:$0xff] }
 0x1f6   : > { %v1253_v16 = vpop.permute.xlu1 %1252  ;;  %v1251_v17 = vpop.permute.xlu0 %1250 }
 0x1f7   : > { %2235 = vst.msk [vmem:[%s2858_s22 + $0x558] sm:$0xff] %vm2062_vm0, %v1253_v16  ;;  %2234 = vst.msk [vmem:[%s2858_s22 + $0x550] sm:$0xff] %vm2062_vm0, %v1251_v17 }
 0x1f8   : > { %1368 = vrot.lane.b32.xlu1 %v371_v14, %s2642_s19  ;;  %1366 = vrot.lane.b32.xlu0 %v370_v15, %s2642_s19  ;;  %v403_v14 = vld [vmem:[%s2731_s20 + $0x82a] sm:$0xff]  ;;  %v402_v15 = vld [vmem:[%s2731_s20 + $0x822] sm:$0xff] }
 0x1fa   : > { %v1257_v20 = vpop.permute.xlu1 %1256  ;;  %v1255_v21 = vpop.permute.xlu0 %1254 }
 0x1fb   : > { %2237 = vst.msk [vmem:[%s2858_s22 + $0x568] sm:$0xff] %vm2062_vm0, %v1257_v20  ;;  %2236 = vst.msk [vmem:[%s2858_s22 + $0x560] sm:$0xff] %vm2062_vm0, %v1255_v21 }
 0x1fc   : > { %1372 = vrot.lane.b32.xlu1 %v373_v18, %s2642_s19  ;;  %1370 = vrot.lane.b32.xlu0 %v372_v19, %s2642_s19  ;;  %v405_v18 = vld [vmem:[%s2731_s20 + $0x83a] sm:$0xf]  ;;  %v404_v19 = vld [vmem:[%s2731_s20 + $0x832] sm:$0xff] }
 0x1fe   : > { %v1261_v24 = vpop.permute.xlu1 %1260  ;;  %v1259_v25 = vpop.permute.xlu0 %1258 }
 0x1ff   : > { %2239 = vst.msk [vmem:[%s2858_s22 + $0x578] sm:$0xff] %vm2062_vm0, %v1261_v24  ;;  %2238 = vst.msk [vmem:[%s2858_s22 + $0x570] sm:$0xff] %vm2062_vm0, %v1259_v25 }
 0x200   : > { %1376 = vrot.lane.b32.xlu1 %v375_v22, %s2642_s19  ;;  %1374 = vrot.lane.b32.xlu0 %v374_v23, %s2642_s19  ;;  %v407_v22 = vld [vmem:[%s2731_s20 + $0x84a] sm:$0xff]  ;;  %v406_v23 = vld [vmem:[%s2731_s20 + $0x842] sm:$0xff] }
 0x202   : > { %v1265_v28 = vpop.permute.xlu1 %1264  ;;  %v1263_v29 = vpop.permute.xlu0 %1262 }
 0x203   : > { %2241 = vst.msk [vmem:[%s2858_s22 + $0x588] sm:$0xff] %vm2062_vm0, %v1265_v28  ;;  %2240 = vst.msk [vmem:[%s2858_s22 + $0x580] sm:$0xff] %vm2062_vm0, %v1263_v29 }
 0x204   : > { %1380 = vrot.lane.b32.xlu1 %v377_v26, %s2642_s19  ;;  %1378 = vrot.lane.b32.xlu0 %v376_v27, %s2642_s19  ;;  %v409_v26 = vld [vmem:[%s2731_s20 + $0x85a] sm:$0xff]  ;;  %v408_v27 = vld [vmem:[%s2731_s20 + $0x852] sm:$0xff] }
 0x206   : > { %v1269_v32 = vpop.permute.xlu1 %1268  ;;  %v1267_v33 = vpop.permute.xlu0 %1266 }
 0x207   : > { %2243 = vst.msk [vmem:[%s2858_s22 + $0x598] sm:$0xf] %vm2074_vm1, %v1269_v32 }
 0x208   : > { %2242 = vst.msk [vmem:[%s2858_s22 + $0x590] sm:$0xff] %vm2062_vm0, %v1267_v33  ;;  %1384 = vrot.lane.b32.xlu1 %v379_v30, %s2642_s19  ;;  %1382 = vrot.lane.b32.xlu0 %v378_v31, %s2642_s19  ;;  %v411_v30 = vld [vmem:[%s2731_s20 + $0x86a] sm:$0xff] }
 0x209   : > { %v410_v31 = vld [vmem:[%s2731_s20 + $0x862] sm:$0xff] }
 0x20a   : > { %v1273_v36 = vpop.permute.xlu1 %1272  ;;  %v1271_v37 = vpop.permute.xlu0 %1270 }
 0x20b   : > { %2245 = vst.msk [vmem:[%s2858_s22 + $0x5a8] sm:$0xff] %vm2062_vm0, %v1273_v36  ;;  %2244 = vst.msk [vmem:[%s2858_s22 + $0x5a0] sm:$0xff] %vm2062_vm0, %v1271_v37 }
 0x20c   : > { %1388 = vrot.lane.b32.xlu1 %v381_v34, %s2642_s19  ;;  %1386 = vrot.lane.b32.xlu0 %v380_v35, %s2642_s19  ;;  %v413_v34 = vld [vmem:[%s2731_s20 + $0x87a] sm:$0xff]  ;;  %v412_v35 = vld [vmem:[%s2731_s20 + $0x872] sm:$0xff] }
 0x20e   : > { %v1277_v40 = vpop.permute.xlu1 %1276  ;;  %v1275_v41 = vpop.permute.xlu0 %1274 }
 0x20f   : > { %2247 = vst.msk [vmem:[%s2858_s22 + $0x5b8] sm:$0xff] %vm2062_vm0, %v1277_v40  ;;  %2246 = vst.msk [vmem:[%s2858_s22 + $0x5b0] sm:$0xff] %vm2062_vm0, %v1275_v41 }
 0x210   : > { %1392 = vrot.lane.b32.xlu1 %v383_v38, %s2642_s19  ;;  %1390 = vrot.lane.b32.xlu0 %v382_v39, %s2642_s19  ;;  %v415_v38 = vld [vmem:[%s2731_s20 + $0x88a] sm:$0xff]  ;;  %v414_v39 = vld [vmem:[%s2731_s20 + $0x882] sm:$0xff] }
 0x212   : > { %v1281_v44 = vpop.permute.xlu1 %1280  ;;  %v1279_v45 = vpop.permute.xlu0 %1278 }
 0x213   : > { %2249 = vst.msk [vmem:[%s2858_s22 + $0x5c8] sm:$0xff] %vm2062_vm0, %v1281_v44  ;;  %2248 = vst.msk [vmem:[%s2858_s22 + $0x5c0] sm:$0xff] %vm2062_vm0, %v1279_v45 }
 0x214   : > { %1396 = vrot.lane.b32.xlu1 %v385_v42, %s2642_s19  ;;  %1394 = vrot.lane.b32.xlu0 %v384_v43, %s2642_s19  ;;  %v417_v42 = vld [vmem:[%s2731_s20 + $0x89a] sm:$0xf]  ;;  %v416_v43 = vld [vmem:[%s2731_s20 + $0x892] sm:$0xff] }
 0x216   : > { %v1285_v48 = vpop.permute.xlu1 %1284  ;;  %v1283_v49 = vpop.permute.xlu0 %1282 }
 0x217   : > { %2251 = vst.msk [vmem:[%s2858_s22 + $0x5d8] sm:$0xff] %vm2062_vm0, %v1285_v48  ;;  %2250 = vst.msk [vmem:[%s2858_s22 + $0x5d0] sm:$0xff] %vm2062_vm0, %v1283_v49 }
 0x218   : > { %1400 = vrot.lane.b32.xlu1 %v387_v46, %s2642_s19  ;;  %1398 = vrot.lane.b32.xlu0 %v386_v47, %s2642_s19  ;;  %v419_v46 = vld [vmem:[%s2731_s20 + $0x8aa] sm:$0xff]  ;;  %v418_v47 = vld [vmem:[%s2731_s20 + $0x8a2] sm:$0xff] }
 0x21a   : > { %v1289_v52 = vpop.permute.xlu1 %1288  ;;  %v1287_v53 = vpop.permute.xlu0 %1286 }
 0x21b   : > { %2253 = vst.msk [vmem:[%s2858_s22 + $0x5e8] sm:$0xff] %vm2062_vm0, %v1289_v52  ;;  %2252 = vst.msk [vmem:[%s2858_s22 + $0x5e0] sm:$0xff] %vm2062_vm0, %v1287_v53 }
 0x21c   : > { %1404 = vrot.lane.b32.xlu1 %v389_v50, %s2642_s19  ;;  %1402 = vrot.lane.b32.xlu0 %v388_v51, %s2642_s19  ;;  %v421_v50 = vld [vmem:[%s2731_s20 + $0x8ba] sm:$0xff]  ;;  %v420_v51 = vld [vmem:[%s2731_s20 + $0x8b2] sm:$0xff] }
 0x21e   : > { %v1293_v56 = vpop.permute.xlu1 %1292  ;;  %v1291_v57 = vpop.permute.xlu0 %1290 }
 0x21f   : > { %2255 = vst.msk [vmem:[%s2858_s22 + $0x5f8] sm:$0xf] %vm2074_vm1, %v1293_v56 }
 0x220   : > { %2254 = vst.msk [vmem:[%s2858_s22 + $0x5f0] sm:$0xff] %vm2062_vm0, %v1291_v57  ;;  %1408 = vrot.lane.b32.xlu1 %v391_v54, %s2642_s19  ;;  %1406 = vrot.lane.b32.xlu0 %v390_v55, %s2642_s19  ;;  %v423_v54 = vld [vmem:[%s2731_s20 + $0x8ca] sm:$0xff] }
 0x221   : > { %v422_v55 = vld [vmem:[%s2731_s20 + $0x8c2] sm:$0xff] }
 0x222   : > { %v1297_v60 = vpop.permute.xlu1 %1296  ;;  %v1295_v61 = vpop.permute.xlu0 %1294 }
 0x223   : > { %2257 = vst.msk [vmem:[%s2858_s22 + $0x608] sm:$0xff] %vm2062_vm0, %v1297_v60  ;;  %2256 = vst.msk [vmem:[%s2858_s22 + $0x600] sm:$0xff] %vm2062_vm0, %v1295_v61 }
 0x224   : > { %1412 = vrot.lane.b32.xlu1 %v393_v58, %s2642_s19  ;;  %1410 = vrot.lane.b32.xlu0 %v392_v59, %s2642_s19  ;;  %v425_v58 = vld [vmem:[%s2731_s20 + $0x8da] sm:$0xff]  ;;  %v424_v59 = vld [vmem:[%s2731_s20 + $0x8d2] sm:$0xff] }
 0x226   : > { %v1301_v0 = vpop.permute.xlu1 %1300  ;;  %v1299_v1 = vpop.permute.xlu0 %1298 }
 0x227   : > { %2259 = vst.msk [vmem:[%s2858_s22 + $0x618] sm:$0xff] %vm2062_vm0, %v1301_v0  ;;  %2258 = vst.msk [vmem:[%s2858_s22 + $0x610] sm:$0xff] %vm2062_vm0, %v1299_v1 }
 0x228   : > { %1416 = vrot.lane.b32.xlu1 %v395_v62, %s2642_s19  ;;  %1414 = vrot.lane.b32.xlu0 %v394_v63, %s2642_s19  ;;  %v427_v62 = vld [vmem:[%s2731_s20 + $0x8ea] sm:$0xff]  ;;  %v426_v63 = vld [vmem:[%s2731_s20 + $0x8e2] sm:$0xff] }
 0x22a   : > { %v1305_v4 = vpop.permute.xlu1 %1304  ;;  %v1303_v5 = vpop.permute.xlu0 %1302 }
 0x22b   : > { %2261 = vst.msk [vmem:[%s2858_s22 + $0x628] sm:$0xff] %vm2062_vm0, %v1305_v4  ;;  %2260 = vst.msk [vmem:[%s2858_s22 + $0x620] sm:$0xff] %vm2062_vm0, %v1303_v5 }
 0x22c   : > { %1420 = vrot.lane.b32.xlu1 %v397_v2, %s2642_s19  ;;  %1418 = vrot.lane.b32.xlu0 %v396_v3, %s2642_s19  ;;  %v429_v2 = vld [vmem:[%s2731_s20 + $0x8fa] sm:$0xf]  ;;  %v428_v3 = vld [vmem:[%s2731_s20 + $0x8f2] sm:$0xff] }
 0x22e   : > { %v1309_v8 = vpop.permute.xlu1 %1308  ;;  %v1307_v9 = vpop.permute.xlu0 %1306 }
 0x22f   : > { %2263 = vst.msk [vmem:[%s2858_s22 + $0x638] sm:$0xff] %vm2062_vm0, %v1309_v8  ;;  %2262 = vst.msk [vmem:[%s2858_s22 + $0x630] sm:$0xff] %vm2062_vm0, %v1307_v9 }
 0x230   : > { %1424 = vrot.lane.b32.xlu1 %v399_v6, %s2642_s19  ;;  %1422 = vrot.lane.b32.xlu0 %v398_v7, %s2642_s19  ;;  %v431_v6 = vld [vmem:[%s2731_s20 + $0x90a] sm:$0xff]  ;;  %v430_v7 = vld [vmem:[%s2731_s20 + $0x902] sm:$0xff] }
 0x232   : > { %v1313_v12 = vpop.permute.xlu1 %1312  ;;  %v1311_v13 = vpop.permute.xlu0 %1310 }
 0x233   : > { %2265 = vst.msk [vmem:[%s2858_s22 + $0x648] sm:$0xff] %vm2062_vm0, %v1313_v12  ;;  %2264 = vst.msk [vmem:[%s2858_s22 + $0x640] sm:$0xff] %vm2062_vm0, %v1311_v13 }
 0x234   : > { %1428 = vrot.lane.b32.xlu1 %v401_v10, %s2642_s19  ;;  %1426 = vrot.lane.b32.xlu0 %v400_v11, %s2642_s19  ;;  %v433_v10 = vld [vmem:[%s2731_s20 + $0x91a] sm:$0xff]  ;;  %v432_v11 = vld [vmem:[%s2731_s20 + $0x912] sm:$0xff] }
 0x236   : > { %v1317_v16 = vpop.permute.xlu1 %1316  ;;  %v1315_v17 = vpop.permute.xlu0 %1314 }
 0x237   : > { %2267 = vst.msk [vmem:[%s2858_s22 + $0x658] sm:$0xf] %vm2074_vm1, %v1317_v16 }
 0x238   : > { %2266 = vst.msk [vmem:[%s2858_s22 + $0x650] sm:$0xff] %vm2062_vm0, %v1315_v17  ;;  %1432 = vrot.lane.b32.xlu1 %v403_v14, %s2642_s19  ;;  %1430 = vrot.lane.b32.xlu0 %v402_v15, %s2642_s19  ;;  %v435_v14 = vld [vmem:[%s2731_s20 + $0x92a] sm:$0xff] }
 0x239   : > { %v434_v15 = vld [vmem:[%s2731_s20 + $0x922] sm:$0xff] }
 0x23a   : > { %v1321_v20 = vpop.permute.xlu1 %1320  ;;  %v1319_v21 = vpop.permute.xlu0 %1318 }
 0x23b   : > { %2269 = vst.msk [vmem:[%s2858_s22 + $0x668] sm:$0xff] %vm2062_vm0, %v1321_v20  ;;  %2268 = vst.msk [vmem:[%s2858_s22 + $0x660] sm:$0xff] %vm2062_vm0, %v1319_v21 }
 0x23c   : > { %1436 = vrot.lane.b32.xlu1 %v405_v18, %s2642_s19  ;;  %1434 = vrot.lane.b32.xlu0 %v404_v19, %s2642_s19  ;;  %v437_v18 = vld [vmem:[%s2731_s20 + $0x93a] sm:$0xff]  ;;  %v436_v19 = vld [vmem:[%s2731_s20 + $0x932] sm:$0xff] }
 0x23e   : > { %v1325_v24 = vpop.permute.xlu1 %1324  ;;  %v1323_v25 = vpop.permute.xlu0 %1322 }
 0x23f   : > { %2271 = vst.msk [vmem:[%s2858_s22 + $0x678] sm:$0xff] %vm2062_vm0, %v1325_v24  ;;  %2270 = vst.msk [vmem:[%s2858_s22 + $0x670] sm:$0xff] %vm2062_vm0, %v1323_v25 }
 0x240   : > { %1440 = vrot.lane.b32.xlu1 %v407_v22, %s2642_s19  ;;  %1438 = vrot.lane.b32.xlu0 %v406_v23, %s2642_s19  ;;  %v439_v22 = vld [vmem:[%s2731_s20 + $0x94a] sm:$0xff]  ;;  %v438_v23 = vld [vmem:[%s2731_s20 + $0x942] sm:$0xff] }
 0x242   : > { %v1329_v28 = vpop.permute.xlu1 %1328  ;;  %v1327_v29 = vpop.permute.xlu0 %1326 }
 0x243   : > { %2273 = vst.msk [vmem:[%s2858_s22 + $0x688] sm:$0xff] %vm2062_vm0, %v1329_v28  ;;  %2272 = vst.msk [vmem:[%s2858_s22 + $0x680] sm:$0xff] %vm2062_vm0, %v1327_v29 }
 0x244   : > { %1444 = vrot.lane.b32.xlu1 %v409_v26, %s2642_s19  ;;  %1442 = vrot.lane.b32.xlu0 %v408_v27, %s2642_s19  ;;  %v441_v26 = vld [vmem:[%s2731_s20 + $0x95a] sm:$0xf]  ;;  %v440_v27 = vld [vmem:[%s2731_s20 + $0x952] sm:$0xff] }
 0x246   : > { %v1333_v32 = vpop.permute.xlu1 %1332  ;;  %v1331_v33 = vpop.permute.xlu0 %1330 }
 0x247   : > { %2275 = vst.msk [vmem:[%s2858_s22 + $0x698] sm:$0xff] %vm2062_vm0, %v1333_v32  ;;  %2274 = vst.msk [vmem:[%s2858_s22 + $0x690] sm:$0xff] %vm2062_vm0, %v1331_v33 }
 0x248   : > { %1448 = vrot.lane.b32.xlu1 %v411_v30, %s2642_s19  ;;  %1446 = vrot.lane.b32.xlu0 %v410_v31, %s2642_s19  ;;  %v443_v30 = vld [vmem:[%s2731_s20 + $0x96a] sm:$0xff]  ;;  %v442_v31 = vld [vmem:[%s2731_s20 + $0x962] sm:$0xff] }
 0x24a   : > { %v1337_v36 = vpop.permute.xlu1 %1336  ;;  %v1335_v37 = vpop.permute.xlu0 %1334 }
 0x24b   : > { %2277 = vst.msk [vmem:[%s2858_s22 + $0x6a8] sm:$0xff] %vm2062_vm0, %v1337_v36  ;;  %2276 = vst.msk [vmem:[%s2858_s22 + $0x6a0] sm:$0xff] %vm2062_vm0, %v1335_v37 }
 0x24c   : > { %1452 = vrot.lane.b32.xlu1 %v413_v34, %s2642_s19  ;;  %1450 = vrot.lane.b32.xlu0 %v412_v35, %s2642_s19  ;;  %v445_v34 = vld [vmem:[%s2731_s20 + $0x97a] sm:$0xff]  ;;  %v444_v35 = vld [vmem:[%s2731_s20 + $0x972] sm:$0xff] }
 0x24e   : > { %v1341_v40 = vpop.permute.xlu1 %1340  ;;  %v1339_v41 = vpop.permute.xlu0 %1338 }
 0x24f   : > { %2279 = vst.msk [vmem:[%s2858_s22 + $0x6b8] sm:$0xf] %vm2074_vm1, %v1341_v40 }
 0x250   : > { %2278 = vst.msk [vmem:[%s2858_s22 + $0x6b0] sm:$0xff] %vm2062_vm0, %v1339_v41  ;;  %1456 = vrot.lane.b32.xlu1 %v415_v38, %s2642_s19  ;;  %1454 = vrot.lane.b32.xlu0 %v414_v39, %s2642_s19  ;;  %v447_v38 = vld [vmem:[%s2731_s20 + $0x98a] sm:$0xff] }
 0x251   : > { %v446_v39 = vld [vmem:[%s2731_s20 + $0x982] sm:$0xff] }
 0x252   : > { %v1345_v44 = vpop.permute.xlu1 %1344  ;;  %v1343_v45 = vpop.permute.xlu0 %1342 }
 0x253   : > { %2281 = vst.msk [vmem:[%s2858_s22 + $0x6c8] sm:$0xff] %vm2062_vm0, %v1345_v44  ;;  %2280 = vst.msk [vmem:[%s2858_s22 + $0x6c0] sm:$0xff] %vm2062_vm0, %v1343_v45 }
 0x254   : > { %1460 = vrot.lane.b32.xlu1 %v417_v42, %s2642_s19  ;;  %1458 = vrot.lane.b32.xlu0 %v416_v43, %s2642_s19  ;;  %v449_v42 = vld [vmem:[%s2731_s20 + $0x99a] sm:$0xff]  ;;  %v448_v43 = vld [vmem:[%s2731_s20 + $0x992] sm:$0xff] }
 0x256   : > { %v1349_v48 = vpop.permute.xlu1 %1348  ;;  %v1347_v49 = vpop.permute.xlu0 %1346 }
 0x257   : > { %2283 = vst.msk [vmem:[%s2858_s22 + $0x6d8] sm:$0xff] %vm2062_vm0, %v1349_v48  ;;  %2282 = vst.msk [vmem:[%s2858_s22 + $0x6d0] sm:$0xff] %vm2062_vm0, %v1347_v49 }
 0x258   : > { %1464 = vrot.lane.b32.xlu1 %v419_v46, %s2642_s19  ;;  %1462 = vrot.lane.b32.xlu0 %v418_v47, %s2642_s19  ;;  %v451_v46 = vld [vmem:[%s2731_s20 + $0x9aa] sm:$0xff]  ;;  %v450_v47 = vld [vmem:[%s2731_s20 + $0x9a2] sm:$0xff] }
 0x25a   : > { %v1353_v52 = vpop.permute.xlu1 %1352  ;;  %v1351_v53 = vpop.permute.xlu0 %1350 }
 0x25b   : > { %2285 = vst.msk [vmem:[%s2858_s22 + $0x6e8] sm:$0xff] %vm2062_vm0, %v1353_v52  ;;  %2284 = vst.msk [vmem:[%s2858_s22 + $0x6e0] sm:$0xff] %vm2062_vm0, %v1351_v53 }
 0x25c   : > { %1468 = vrot.lane.b32.xlu1 %v421_v50, %s2642_s19  ;;  %1466 = vrot.lane.b32.xlu0 %v420_v51, %s2642_s19  ;;  %v453_v50 = vld [vmem:[%s2731_s20 + $0x9ba] sm:$0xf]  ;;  %v452_v51 = vld [vmem:[%s2731_s20 + $0x9b2] sm:$0xff] }
 0x25e   : > { %v1357_v56 = vpop.permute.xlu1 %1356  ;;  %v1355_v57 = vpop.permute.xlu0 %1354 }
 0x25f   : > { %2287 = vst.msk [vmem:[%s2858_s22 + $0x6f8] sm:$0xff] %vm2062_vm0, %v1357_v56  ;;  %2286 = vst.msk [vmem:[%s2858_s22 + $0x6f0] sm:$0xff] %vm2062_vm0, %v1355_v57 }
 0x260   : > { %1472 = vrot.lane.b32.xlu1 %v423_v54, %s2642_s19  ;;  %1470 = vrot.lane.b32.xlu0 %v422_v55, %s2642_s19  ;;  %v455_v54 = vld [vmem:[%s2731_s20 + $0x9ca] sm:$0xff]  ;;  %v454_v55 = vld [vmem:[%s2731_s20 + $0x9c2] sm:$0xff] }
 0x262   : > { %v1361_v60 = vpop.permute.xlu1 %1360  ;;  %v1359_v61 = vpop.permute.xlu0 %1358 }
 0x263   : > { %2289 = vst.msk [vmem:[%s2858_s22 + $0x708] sm:$0xff] %vm2062_vm0, %v1361_v60  ;;  %2288 = vst.msk [vmem:[%s2858_s22 + $0x700] sm:$0xff] %vm2062_vm0, %v1359_v61 }
 0x264   : > { %1476 = vrot.lane.b32.xlu1 %v425_v58, %s2642_s19  ;;  %1474 = vrot.lane.b32.xlu0 %v424_v59, %s2642_s19  ;;  %v457_v58 = vld [vmem:[%s2731_s20 + $0x9da] sm:$0xff]  ;;  %v456_v59 = vld [vmem:[%s2731_s20 + $0x9d2] sm:$0xff] }
 0x266   : > { %v1365_v0 = vpop.permute.xlu1 %1364  ;;  %v1363_v1 = vpop.permute.xlu0 %1362 }
 0x267   : > { %2291 = vst.msk [vmem:[%s2858_s22 + $0x718] sm:$0xf] %vm2074_vm1, %v1365_v0 }
 0x268   : > { %2290 = vst.msk [vmem:[%s2858_s22 + $0x710] sm:$0xff] %vm2062_vm0, %v1363_v1  ;;  %1480 = vrot.lane.b32.xlu1 %v427_v62, %s2642_s19  ;;  %1478 = vrot.lane.b32.xlu0 %v426_v63, %s2642_s19  ;;  %v459_v62 = vld [vmem:[%s2731_s20 + $0x9ea] sm:$0xff] }
 0x269   : > { %v458_v63 = vld [vmem:[%s2731_s20 + $0x9e2] sm:$0xff] }
 0x26a   : > { %v1369_v4 = vpop.permute.xlu1 %1368  ;;  %v1367_v5 = vpop.permute.xlu0 %1366 }
 0x26b   : > { %2293 = vst.msk [vmem:[%s2858_s22 + $0x728] sm:$0xff] %vm2062_vm0, %v1369_v4  ;;  %2292 = vst.msk [vmem:[%s2858_s22 + $0x720] sm:$0xff] %vm2062_vm0, %v1367_v5 }
 0x26c   : > { %1484 = vrot.lane.b32.xlu1 %v429_v2, %s2642_s19  ;;  %1482 = vrot.lane.b32.xlu0 %v428_v3, %s2642_s19  ;;  %v461_v2 = vld [vmem:[%s2731_s20 + $0x9fa] sm:$0xff]  ;;  %v460_v3 = vld [vmem:[%s2731_s20 + $0x9f2] sm:$0xff] }
 0x26e   : > { %v1373_v8 = vpop.permute.xlu1 %1372  ;;  %v1371_v9 = vpop.permute.xlu0 %1370 }
 0x26f   : > { %2295 = vst.msk [vmem:[%s2858_s22 + $0x738] sm:$0xff] %vm2062_vm0, %v1373_v8  ;;  %2294 = vst.msk [vmem:[%s2858_s22 + $0x730] sm:$0xff] %vm2062_vm0, %v1371_v9 }
 0x270   : > { %1488 = vrot.lane.b32.xlu1 %v431_v6, %s2642_s19  ;;  %1486 = vrot.lane.b32.xlu0 %v430_v7, %s2642_s19  ;;  %v463_v6 = vld [vmem:[%s2731_s20 + $0xa0a] sm:$0xff]  ;;  %v462_v7 = vld [vmem:[%s2731_s20 + $0xa02] sm:$0xff] }
 0x272   : > { %v1377_v12 = vpop.permute.xlu1 %1376  ;;  %v1375_v13 = vpop.permute.xlu0 %1374 }
 0x273   : > { %2297 = vst.msk [vmem:[%s2858_s22 + $0x748] sm:$0xff] %vm2062_vm0, %v1377_v12  ;;  %2296 = vst.msk [vmem:[%s2858_s22 + $0x740] sm:$0xff] %vm2062_vm0, %v1375_v13 }
 0x274   : > { %1492 = vrot.lane.b32.xlu1 %v433_v10, %s2642_s19  ;;  %1490 = vrot.lane.b32.xlu0 %v432_v11, %s2642_s19  ;;  %v465_v10 = vld [vmem:[%s2731_s20 + $0xa1a] sm:$0xf]  ;;  %v464_v11 = vld [vmem:[%s2731_s20 + $0xa12] sm:$0xff] }
 0x276   : > { %v1381_v16 = vpop.permute.xlu1 %1380  ;;  %v1379_v17 = vpop.permute.xlu0 %1378 }
 0x277   : > { %2299 = vst.msk [vmem:[%s2858_s22 + $0x758] sm:$0xff] %vm2062_vm0, %v1381_v16  ;;  %2298 = vst.msk [vmem:[%s2858_s22 + $0x750] sm:$0xff] %vm2062_vm0, %v1379_v17 }
 0x278   : > { %1496 = vrot.lane.b32.xlu1 %v435_v14, %s2642_s19  ;;  %1494 = vrot.lane.b32.xlu0 %v434_v15, %s2642_s19  ;;  %v467_v14 = vld [vmem:[%s2731_s20 + $0xa2a] sm:$0xff]  ;;  %v466_v15 = vld [vmem:[%s2731_s20 + $0xa22] sm:$0xff] }
 0x27a   : > { %v1385_v20 = vpop.permute.xlu1 %1384  ;;  %v1383_v21 = vpop.permute.xlu0 %1382 }
 0x27b   : > { %2301 = vst.msk [vmem:[%s2858_s22 + $0x768] sm:$0xff] %vm2062_vm0, %v1385_v20  ;;  %2300 = vst.msk [vmem:[%s2858_s22 + $0x760] sm:$0xff] %vm2062_vm0, %v1383_v21 }
 0x27c   : > { %1500 = vrot.lane.b32.xlu1 %v437_v18, %s2642_s19  ;;  %1498 = vrot.lane.b32.xlu0 %v436_v19, %s2642_s19  ;;  %v469_v18 = vld [vmem:[%s2731_s20 + $0xa3a] sm:$0xff]  ;;  %v468_v19 = vld [vmem:[%s2731_s20 + $0xa32] sm:$0xff] }
 0x27e   : > { %v1389_v24 = vpop.permute.xlu1 %1388  ;;  %v1387_v25 = vpop.permute.xlu0 %1386 }
 0x27f   : > { %2303 = vst.msk [vmem:[%s2858_s22 + $0x778] sm:$0xf] %vm2074_vm1, %v1389_v24 }
 0x280   : > { %2302 = vst.msk [vmem:[%s2858_s22 + $0x770] sm:$0xff] %vm2062_vm0, %v1387_v25  ;;  %1504 = vrot.lane.b32.xlu1 %v439_v22, %s2642_s19  ;;  %1502 = vrot.lane.b32.xlu0 %v438_v23, %s2642_s19  ;;  %v471_v22 = vld [vmem:[%s2731_s20 + $0xa4a] sm:$0xff] }
 0x281   : > { %v470_v23 = vld [vmem:[%s2731_s20 + $0xa42] sm:$0xff] }
 0x282   : > { %v1393_v28 = vpop.permute.xlu1 %1392  ;;  %v1391_v29 = vpop.permute.xlu0 %1390 }
 0x283   : > { %2305 = vst.msk [vmem:[%s2858_s22 + $0x788] sm:$0xff] %vm2062_vm0, %v1393_v28  ;;  %2304 = vst.msk [vmem:[%s2858_s22 + $0x780] sm:$0xff] %vm2062_vm0, %v1391_v29 }
 0x284   : > { %1508 = vrot.lane.b32.xlu1 %v441_v26, %s2642_s19  ;;  %1506 = vrot.lane.b32.xlu0 %v440_v27, %s2642_s19  ;;  %v473_v26 = vld [vmem:[%s2731_s20 + $0xa5a] sm:$0xff]  ;;  %v472_v27 = vld [vmem:[%s2731_s20 + $0xa52] sm:$0xff] }
 0x286   : > { %v1397_v32 = vpop.permute.xlu1 %1396  ;;  %v1395_v33 = vpop.permute.xlu0 %1394 }
 0x287   : > { %2307 = vst.msk [vmem:[%s2858_s22 + $0x798] sm:$0xff] %vm2062_vm0, %v1397_v32  ;;  %2306 = vst.msk [vmem:[%s2858_s22 + $0x790] sm:$0xff] %vm2062_vm0, %v1395_v33 }
 0x288   : > { %1512 = vrot.lane.b32.xlu1 %v443_v30, %s2642_s19  ;;  %1510 = vrot.lane.b32.xlu0 %v442_v31, %s2642_s19  ;;  %v475_v30 = vld [vmem:[%s2731_s20 + $0xa6a] sm:$0xff]  ;;  %v474_v31 = vld [vmem:[%s2731_s20 + $0xa62] sm:$0xff] }
 0x28a   : > { %v1401_v36 = vpop.permute.xlu1 %1400  ;;  %v1399_v37 = vpop.permute.xlu0 %1398 }
 0x28b   : > { %2309 = vst.msk [vmem:[%s2858_s22 + $0x7a8] sm:$0xff] %vm2062_vm0, %v1401_v36  ;;  %2308 = vst.msk [vmem:[%s2858_s22 + $0x7a0] sm:$0xff] %vm2062_vm0, %v1399_v37 }
 0x28c   : > { %1516 = vrot.lane.b32.xlu1 %v445_v34, %s2642_s19  ;;  %1514 = vrot.lane.b32.xlu0 %v444_v35, %s2642_s19  ;;  %v477_v34 = vld [vmem:[%s2731_s20 + $0xa7a] sm:$0xf]  ;;  %v476_v35 = vld [vmem:[%s2731_s20 + $0xa72] sm:$0xff] }
 0x28e   : > { %v1405_v40 = vpop.permute.xlu1 %1404  ;;  %v1403_v41 = vpop.permute.xlu0 %1402 }
 0x28f   : > { %2311 = vst.msk [vmem:[%s2858_s22 + $0x7b8] sm:$0xff] %vm2062_vm0, %v1405_v40  ;;  %2310 = vst.msk [vmem:[%s2858_s22 + $0x7b0] sm:$0xff] %vm2062_vm0, %v1403_v41 }
 0x290   : > { %1520 = vrot.lane.b32.xlu1 %v447_v38, %s2642_s19  ;;  %1518 = vrot.lane.b32.xlu0 %v446_v39, %s2642_s19  ;;  %v479_v38 = vld [vmem:[%s2731_s20 + $0xa8a] sm:$0xff]  ;;  %v478_v39 = vld [vmem:[%s2731_s20 + $0xa82] sm:$0xff] }
 0x292   : > { %v1409_v44 = vpop.permute.xlu1 %1408  ;;  %v1407_v45 = vpop.permute.xlu0 %1406 }
 0x293   : > { %2313 = vst.msk [vmem:[%s2858_s22 + $0x7c8] sm:$0xff] %vm2062_vm0, %v1409_v44  ;;  %2312 = vst.msk [vmem:[%s2858_s22 + $0x7c0] sm:$0xff] %vm2062_vm0, %v1407_v45 }
 0x294   : > { %1524 = vrot.lane.b32.xlu1 %v449_v42, %s2642_s19  ;;  %1522 = vrot.lane.b32.xlu0 %v448_v43, %s2642_s19  ;;  %v481_v42 = vld [vmem:[%s2731_s20 + $0xa9a] sm:$0xff]  ;;  %v480_v43 = vld [vmem:[%s2731_s20 + $0xa92] sm:$0xff] }
 0x296   : > { %v1413_v48 = vpop.permute.xlu1 %1412  ;;  %v1411_v49 = vpop.permute.xlu0 %1410 }
 0x297   : > { %2315 = vst.msk [vmem:[%s2858_s22 + $0x7d8] sm:$0xf] %vm2074_vm1, %v1413_v48 }
 0x298   : > { %2314 = vst.msk [vmem:[%s2858_s22 + $0x7d0] sm:$0xff] %vm2062_vm0, %v1411_v49  ;;  %1528 = vrot.lane.b32.xlu1 %v451_v46, %s2642_s19  ;;  %1526 = vrot.lane.b32.xlu0 %v450_v47, %s2642_s19  ;;  %v483_v46 = vld [vmem:[%s2731_s20 + $0xaaa] sm:$0xff] }
 0x299   : > { %v482_v47 = vld [vmem:[%s2731_s20 + $0xaa2] sm:$0xff] }
 0x29a   : > { %v1417_v52 = vpop.permute.xlu1 %1416  ;;  %v1415_v53 = vpop.permute.xlu0 %1414 }
 0x29b   : > { %2317 = vst.msk [vmem:[%s2858_s22 + $0x7e8] sm:$0xff] %vm2062_vm0, %v1417_v52  ;;  %2316 = vst.msk [vmem:[%s2858_s22 + $0x7e0] sm:$0xff] %vm2062_vm0, %v1415_v53 }
 0x29c   : > { %1532 = vrot.lane.b32.xlu1 %v453_v50, %s2642_s19  ;;  %1530 = vrot.lane.b32.xlu0 %v452_v51, %s2642_s19  ;;  %v485_v50 = vld [vmem:[%s2731_s20 + $0xaba] sm:$0xff]  ;;  %v484_v51 = vld [vmem:[%s2731_s20 + $0xab2] sm:$0xff] }
 0x29e   : > { %v1421_v56 = vpop.permute.xlu1 %1420  ;;  %v1419_v57 = vpop.permute.xlu0 %1418 }
 0x29f   : > { %2319 = vst.msk [vmem:[%s2858_s22 + $0x7f8] sm:$0xff] %vm2062_vm0, %v1421_v56  ;;  %2318 = vst.msk [vmem:[%s2858_s22 + $0x7f0] sm:$0xff] %vm2062_vm0, %v1419_v57 }
 0x2a0   : > { %1536 = vrot.lane.b32.xlu1 %v455_v54, %s2642_s19  ;;  %1534 = vrot.lane.b32.xlu0 %v454_v55, %s2642_s19  ;;  %v487_v54 = vld [vmem:[%s2731_s20 + $0xaca] sm:$0xff]  ;;  %v486_v55 = vld [vmem:[%s2731_s20 + $0xac2] sm:$0xff] }
 0x2a2   : > { %v1425_v60 = vpop.permute.xlu1 %1424  ;;  %v1423_v61 = vpop.permute.xlu0 %1422 }
 0x2a3   : > { %2321 = vst.msk [vmem:[%s2858_s22 + $0x808] sm:$0xff] %vm2062_vm0, %v1425_v60  ;;  %2320 = vst.msk [vmem:[%s2858_s22 + $0x800] sm:$0xff] %vm2062_vm0, %v1423_v61 }
 0x2a4   : > { %1540 = vrot.lane.b32.xlu1 %v457_v58, %s2642_s19  ;;  %1538 = vrot.lane.b32.xlu0 %v456_v59, %s2642_s19  ;;  %v489_v58 = vld [vmem:[%s2731_s20 + $0xada] sm:$0xf]  ;;  %v488_v59 = vld [vmem:[%s2731_s20 + $0xad2] sm:$0xff] }
 0x2a6   : > { %v1429_v0 = vpop.permute.xlu1 %1428  ;;  %v1427_v1 = vpop.permute.xlu0 %1426 }
 0x2a7   : > { %2323 = vst.msk [vmem:[%s2858_s22 + $0x818] sm:$0xff] %vm2062_vm0, %v1429_v0  ;;  %2322 = vst.msk [vmem:[%s2858_s22 + $0x810] sm:$0xff] %vm2062_vm0, %v1427_v1 }
 0x2a8   : > { %1544 = vrot.lane.b32.xlu1 %v459_v62, %s2642_s19  ;;  %1542 = vrot.lane.b32.xlu0 %v458_v63, %s2642_s19  ;;  %v491_v62 = vld [vmem:[%s2731_s20 + $0xaea] sm:$0xff]  ;;  %v490_v63 = vld [vmem:[%s2731_s20 + $0xae2] sm:$0xff] }
 0x2aa   : > { %v1433_v4 = vpop.permute.xlu1 %1432  ;;  %v1431_v5 = vpop.permute.xlu0 %1430 }
 0x2ab   : > { %2325 = vst.msk [vmem:[%s2858_s22 + $0x828] sm:$0xff] %vm2062_vm0, %v1433_v4  ;;  %2324 = vst.msk [vmem:[%s2858_s22 + $0x820] sm:$0xff] %vm2062_vm0, %v1431_v5 }
 0x2ac   : > { %1548 = vrot.lane.b32.xlu1 %v461_v2, %s2642_s19  ;;  %1546 = vrot.lane.b32.xlu0 %v460_v3, %s2642_s19  ;;  %v493_v2 = vld [vmem:[%s2731_s20 + $0xafa] sm:$0xff]  ;;  %v492_v3 = vld [vmem:[%s2731_s20 + $0xaf2] sm:$0xff] }
 0x2ae   : > { %v1437_v8 = vpop.permute.xlu1 %1436  ;;  %v1435_v9 = vpop.permute.xlu0 %1434 }
 0x2af   : > { %2327 = vst.msk [vmem:[%s2858_s22 + $0x838] sm:$0xf] %vm2074_vm1, %v1437_v8 }
 0x2b0   : > { %2326 = vst.msk [vmem:[%s2858_s22 + $0x830] sm:$0xff] %vm2062_vm0, %v1435_v9  ;;  %1552 = vrot.lane.b32.xlu1 %v463_v6, %s2642_s19  ;;  %1550 = vrot.lane.b32.xlu0 %v462_v7, %s2642_s19  ;;  %v495_v6 = vld [vmem:[%s2731_s20 + $0xb0a] sm:$0xff] }
 0x2b1   : > { %v494_v7 = vld [vmem:[%s2731_s20 + $0xb02] sm:$0xff] }
 0x2b2   : > { %v1441_v12 = vpop.permute.xlu1 %1440  ;;  %v1439_v13 = vpop.permute.xlu0 %1438 }
 0x2b3   : > { %2329 = vst.msk [vmem:[%s2858_s22 + $0x848] sm:$0xff] %vm2062_vm0, %v1441_v12  ;;  %2328 = vst.msk [vmem:[%s2858_s22 + $0x840] sm:$0xff] %vm2062_vm0, %v1439_v13 }
 0x2b4   : > { %1556 = vrot.lane.b32.xlu1 %v465_v10, %s2642_s19  ;;  %1554 = vrot.lane.b32.xlu0 %v464_v11, %s2642_s19  ;;  %v497_v10 = vld [vmem:[%s2731_s20 + $0xb1a] sm:$0xff]  ;;  %v496_v11 = vld [vmem:[%s2731_s20 + $0xb12] sm:$0xff] }
 0x2b6   : > { %v1445_v16 = vpop.permute.xlu1 %1444  ;;  %v1443_v17 = vpop.permute.xlu0 %1442 }
 0x2b7   : > { %2331 = vst.msk [vmem:[%s2858_s22 + $0x858] sm:$0xff] %vm2062_vm0, %v1445_v16  ;;  %2330 = vst.msk [vmem:[%s2858_s22 + $0x850] sm:$0xff] %vm2062_vm0, %v1443_v17 }
 0x2b8   : > { %1560 = vrot.lane.b32.xlu1 %v467_v14, %s2642_s19  ;;  %1558 = vrot.lane.b32.xlu0 %v466_v15, %s2642_s19  ;;  %v499_v14 = vld [vmem:[%s2731_s20 + $0xb2a] sm:$0xff]  ;;  %v498_v15 = vld [vmem:[%s2731_s20 + $0xb22] sm:$0xff] }
 0x2ba   : > { %v1449_v20 = vpop.permute.xlu1 %1448  ;;  %v1447_v21 = vpop.permute.xlu0 %1446 }
 0x2bb   : > { %2333 = vst.msk [vmem:[%s2858_s22 + $0x868] sm:$0xff] %vm2062_vm0, %v1449_v20  ;;  %2332 = vst.msk [vmem:[%s2858_s22 + $0x860] sm:$0xff] %vm2062_vm0, %v1447_v21 }
 0x2bc   : > { %1564 = vrot.lane.b32.xlu1 %v469_v18, %s2642_s19  ;;  %1562 = vrot.lane.b32.xlu0 %v468_v19, %s2642_s19  ;;  %v501_v18 = vld [vmem:[%s2731_s20 + $0xb3a] sm:$0xf]  ;;  %v500_v19 = vld [vmem:[%s2731_s20 + $0xb32] sm:$0xff] }
 0x2be   : > { %v1453_v24 = vpop.permute.xlu1 %1452  ;;  %v1451_v25 = vpop.permute.xlu0 %1450 }
 0x2bf   : > { %2335 = vst.msk [vmem:[%s2858_s22 + $0x878] sm:$0xff] %vm2062_vm0, %v1453_v24  ;;  %2334 = vst.msk [vmem:[%s2858_s22 + $0x870] sm:$0xff] %vm2062_vm0, %v1451_v25 }
 0x2c0   : > { %1568 = vrot.lane.b32.xlu1 %v471_v22, %s2642_s19  ;;  %1566 = vrot.lane.b32.xlu0 %v470_v23, %s2642_s19  ;;  %v503_v22 = vld [vmem:[%s2731_s20 + $0xb4a] sm:$0xff]  ;;  %v502_v23 = vld [vmem:[%s2731_s20 + $0xb42] sm:$0xff] }
 0x2c2   : > { %v1457_v28 = vpop.permute.xlu1 %1456  ;;  %v1455_v29 = vpop.permute.xlu0 %1454 }
 0x2c3   : > { %2337 = vst.msk [vmem:[%s2858_s22 + $0x888] sm:$0xff] %vm2062_vm0, %v1457_v28  ;;  %2336 = vst.msk [vmem:[%s2858_s22 + $0x880] sm:$0xff] %vm2062_vm0, %v1455_v29 }
 0x2c4   : > { %1572 = vrot.lane.b32.xlu1 %v473_v26, %s2642_s19  ;;  %1570 = vrot.lane.b32.xlu0 %v472_v27, %s2642_s19  ;;  %v505_v26 = vld [vmem:[%s2731_s20 + $0xb5a] sm:$0xff]  ;;  %v504_v27 = vld [vmem:[%s2731_s20 + $0xb52] sm:$0xff] }
 0x2c6   : > { %v1461_v32 = vpop.permute.xlu1 %1460  ;;  %v1459_v33 = vpop.permute.xlu0 %1458 }
 0x2c7   : > { %2339 = vst.msk [vmem:[%s2858_s22 + $0x898] sm:$0xf] %vm2074_vm1, %v1461_v32 }
 0x2c8   : > { %2338 = vst.msk [vmem:[%s2858_s22 + $0x890] sm:$0xff] %vm2062_vm0, %v1459_v33  ;;  %1576 = vrot.lane.b32.xlu1 %v475_v30, %s2642_s19  ;;  %1574 = vrot.lane.b32.xlu0 %v474_v31, %s2642_s19  ;;  %v507_v30 = vld [vmem:[%s2731_s20 + $0xb6a] sm:$0xff] }
 0x2c9   : > { %v506_v31 = vld [vmem:[%s2731_s20 + $0xb62] sm:$0xff] }
 0x2ca   : > { %v1465_v36 = vpop.permute.xlu1 %1464  ;;  %v1463_v37 = vpop.permute.xlu0 %1462 }
 0x2cb   : > { %2341 = vst.msk [vmem:[%s2858_s22 + $0x8a8] sm:$0xff] %vm2062_vm0, %v1465_v36  ;;  %2340 = vst.msk [vmem:[%s2858_s22 + $0x8a0] sm:$0xff] %vm2062_vm0, %v1463_v37 }
 0x2cc   : > { %1580 = vrot.lane.b32.xlu1 %v477_v34, %s2642_s19  ;;  %1578 = vrot.lane.b32.xlu0 %v476_v35, %s2642_s19  ;;  %v509_v34 = vld [vmem:[%s2731_s20 + $0xb7a] sm:$0xff]  ;;  %v508_v35 = vld [vmem:[%s2731_s20 + $0xb72] sm:$0xff] }
 0x2ce   : > { %v1469_v40 = vpop.permute.xlu1 %1468  ;;  %v1467_v41 = vpop.permute.xlu0 %1466 }
 0x2cf   : > { %2343 = vst.msk [vmem:[%s2858_s22 + $0x8b8] sm:$0xff] %vm2062_vm0, %v1469_v40  ;;  %2342 = vst.msk [vmem:[%s2858_s22 + $0x8b0] sm:$0xff] %vm2062_vm0, %v1467_v41 }
 0x2d0   : > { %1584 = vrot.lane.b32.xlu1 %v479_v38, %s2642_s19  ;;  %1582 = vrot.lane.b32.xlu0 %v478_v39, %s2642_s19  ;;  %v511_v38 = vld [vmem:[%s2731_s20 + $0xb8a] sm:$0xff]  ;;  %v510_v39 = vld [vmem:[%s2731_s20 + $0xb82] sm:$0xff] }
 0x2d2   : > { %v1473_v44 = vpop.permute.xlu1 %1472  ;;  %v1471_v45 = vpop.permute.xlu0 %1470 }
 0x2d3   : > { %2345 = vst.msk [vmem:[%s2858_s22 + $0x8c8] sm:$0xff] %vm2062_vm0, %v1473_v44  ;;  %2344 = vst.msk [vmem:[%s2858_s22 + $0x8c0] sm:$0xff] %vm2062_vm0, %v1471_v45 }
 0x2d4   : > { %1588 = vrot.lane.b32.xlu1 %v481_v42, %s2642_s19  ;;  %1586 = vrot.lane.b32.xlu0 %v480_v43, %s2642_s19  ;;  %v513_v42 = vld [vmem:[%s2731_s20 + $0xb9a] sm:$0xf]  ;;  %v512_v43 = vld [vmem:[%s2731_s20 + $0xb92] sm:$0xff] }
 0x2d6   : > { %v1477_v48 = vpop.permute.xlu1 %1476  ;;  %v1475_v49 = vpop.permute.xlu0 %1474 }
 0x2d7   : > { %2347 = vst.msk [vmem:[%s2858_s22 + $0x8d8] sm:$0xff] %vm2062_vm0, %v1477_v48  ;;  %2346 = vst.msk [vmem:[%s2858_s22 + $0x8d0] sm:$0xff] %vm2062_vm0, %v1475_v49 }
 0x2d8   : > { %1592 = vrot.lane.b32.xlu1 %v483_v46, %s2642_s19  ;;  %1590 = vrot.lane.b32.xlu0 %v482_v47, %s2642_s19  ;;  %v515_v46 = vld [vmem:[%s2731_s20 + $0xbaa] sm:$0xff]  ;;  %v514_v47 = vld [vmem:[%s2731_s20 + $0xba2] sm:$0xff] }
 0x2da   : > { %v1481_v52 = vpop.permute.xlu1 %1480  ;;  %v1479_v53 = vpop.permute.xlu0 %1478 }
 0x2db   : > { %2349 = vst.msk [vmem:[%s2858_s22 + $0x8e8] sm:$0xff] %vm2062_vm0, %v1481_v52  ;;  %2348 = vst.msk [vmem:[%s2858_s22 + $0x8e0] sm:$0xff] %vm2062_vm0, %v1479_v53 }
 0x2dc   : > { %1596 = vrot.lane.b32.xlu1 %v485_v50, %s2642_s19  ;;  %1594 = vrot.lane.b32.xlu0 %v484_v51, %s2642_s19  ;;  %v517_v50 = vld [vmem:[%s2731_s20 + $0xbba] sm:$0xff]  ;;  %v516_v51 = vld [vmem:[%s2731_s20 + $0xbb2] sm:$0xff] }
 0x2de   : > { %v1485_v56 = vpop.permute.xlu1 %1484  ;;  %v1483_v57 = vpop.permute.xlu0 %1482 }
 0x2df   : > { %2351 = vst.msk [vmem:[%s2858_s22 + $0x8f8] sm:$0xf] %vm2074_vm1, %v1485_v56 }
 0x2e0   : > { %2350 = vst.msk [vmem:[%s2858_s22 + $0x8f0] sm:$0xff] %vm2062_vm0, %v1483_v57  ;;  %1600 = vrot.lane.b32.xlu1 %v487_v54, %s2642_s19  ;;  %1598 = vrot.lane.b32.xlu0 %v486_v55, %s2642_s19  ;;  %v519_v54 = vld [vmem:[%s2731_s20 + $0xbca] sm:$0xff] }
 0x2e1   : > { %v518_v55 = vld [vmem:[%s2731_s20 + $0xbc2] sm:$0xff] }
 0x2e2   : > { %v1489_v60 = vpop.permute.xlu1 %1488  ;;  %v1487_v61 = vpop.permute.xlu0 %1486 }
 0x2e3   : > { %2353 = vst.msk [vmem:[%s2858_s22 + $0x908] sm:$0xff] %vm2062_vm0, %v1489_v60  ;;  %2352 = vst.msk [vmem:[%s2858_s22 + $0x900] sm:$0xff] %vm2062_vm0, %v1487_v61 }
 0x2e4   : > { %1604 = vrot.lane.b32.xlu1 %v489_v58, %s2642_s19  ;;  %1602 = vrot.lane.b32.xlu0 %v488_v59, %s2642_s19  ;;  %v521_v58 = vld [vmem:[%s2731_s20 + $0xbda] sm:$0xff]  ;;  %v520_v59 = vld [vmem:[%s2731_s20 + $0xbd2] sm:$0xff] }
 0x2e6   : > { %v1493_v0 = vpop.permute.xlu1 %1492  ;;  %v1491_v1 = vpop.permute.xlu0 %1490 }
 0x2e7   : > { %2355 = vst.msk [vmem:[%s2858_s22 + $0x918] sm:$0xff] %vm2062_vm0, %v1493_v0  ;;  %2354 = vst.msk [vmem:[%s2858_s22 + $0x910] sm:$0xff] %vm2062_vm0, %v1491_v1 }
 0x2e8   : > { %1608 = vrot.lane.b32.xlu1 %v491_v62, %s2642_s19  ;;  %1606 = vrot.lane.b32.xlu0 %v490_v63, %s2642_s19  ;;  %v523_v62 = vld [vmem:[%s2731_s20 + $0xbea] sm:$0xff]  ;;  %v522_v63 = vld [vmem:[%s2731_s20 + $0xbe2] sm:$0xff] }
 0x2ea   : > { %v1497_v4 = vpop.permute.xlu1 %1496  ;;  %v1495_v5 = vpop.permute.xlu0 %1494 }
 0x2eb   : > { %2357 = vst.msk [vmem:[%s2858_s22 + $0x928] sm:$0xff] %vm2062_vm0, %v1497_v4  ;;  %2356 = vst.msk [vmem:[%s2858_s22 + $0x920] sm:$0xff] %vm2062_vm0, %v1495_v5 }
 0x2ec   : > { %1612 = vrot.lane.b32.xlu1 %v493_v2, %s2642_s19  ;;  %1610 = vrot.lane.b32.xlu0 %v492_v3, %s2642_s19  ;;  %v525_v2 = vld [vmem:[%s2731_s20 + $0xbfa] sm:$0xf]  ;;  %v524_v3 = vld [vmem:[%s2731_s20 + $0xbf2] sm:$0xff] }
 0x2ee   : > { %v1501_v8 = vpop.permute.xlu1 %1500  ;;  %v1499_v9 = vpop.permute.xlu0 %1498 }
 0x2ef   : > { %2359 = vst.msk [vmem:[%s2858_s22 + $0x938] sm:$0xff] %vm2062_vm0, %v1501_v8  ;;  %2358 = vst.msk [vmem:[%s2858_s22 + $0x930] sm:$0xff] %vm2062_vm0, %v1499_v9 }
 0x2f0   : > { %1616 = vrot.lane.b32.xlu1 %v495_v6, %s2642_s19  ;;  %1614 = vrot.lane.b32.xlu0 %v494_v7, %s2642_s19 }
 0x2f2   : > { %v1505_v12 = vpop.permute.xlu1 %1504  ;;  %v1503_v13 = vpop.permute.xlu0 %1502 }
 0x2f3   : > { %2361 = vst.msk [vmem:[%s2858_s22 + $0x948] sm:$0xff] %vm2062_vm0, %v1505_v12  ;;  %2360 = vst.msk [vmem:[%s2858_s22 + $0x940] sm:$0xff] %vm2062_vm0, %v1503_v13 }
 0x2f4   : > { %1620 = vrot.lane.b32.xlu1 %v497_v10, %s2642_s19  ;;  %1618 = vrot.lane.b32.xlu0 %v496_v11, %s2642_s19 }
 0x2f6   : > { %v1509_v16 = vpop.permute.xlu1 %1508  ;;  %v1507_v17 = vpop.permute.xlu0 %1506 }
 0x2f7   : > { %2363 = vst.msk [vmem:[%s2858_s22 + $0x958] sm:$0xf] %vm2074_vm1, %v1509_v16 }
 0x2f8   : > { %2362 = vst.msk [vmem:[%s2858_s22 + $0x950] sm:$0xff] %vm2062_vm0, %v1507_v17  ;;  %1624 = vrot.lane.b32.xlu1 %v499_v14, %s2642_s19  ;;  %1622 = vrot.lane.b32.xlu0 %v498_v15, %s2642_s19 }
 0x2fa   : > { %v1513_v20 = vpop.permute.xlu1 %1512  ;;  %v1511_v21 = vpop.permute.xlu0 %1510 }
 0x2fb   : > { %2365 = vst.msk [vmem:[%s2858_s22 + $0x968] sm:$0xff] %vm2062_vm0, %v1513_v20  ;;  %2364 = vst.msk [vmem:[%s2858_s22 + $0x960] sm:$0xff] %vm2062_vm0, %v1511_v21 }
 0x2fc   : > { %1628 = vrot.lane.b32.xlu1 %v501_v18, %s2642_s19  ;;  %1626 = vrot.lane.b32.xlu0 %v500_v19, %s2642_s19 }
 0x2fe   : > { %v1517_v24 = vpop.permute.xlu1 %1516  ;;  %v1515_v25 = vpop.permute.xlu0 %1514 }
 0x2ff   : > { %2367 = vst.msk [vmem:[%s2858_s22 + $0x978] sm:$0xff] %vm2062_vm0, %v1517_v24  ;;  %2366 = vst.msk [vmem:[%s2858_s22 + $0x970] sm:$0xff] %vm2062_vm0, %v1515_v25 }
 0x300   : > { %1632 = vrot.lane.b32.xlu1 %v503_v22, %s2642_s19  ;;  %1630 = vrot.lane.b32.xlu0 %v502_v23, %s2642_s19 }
 0x302   : > { %v1521_v28 = vpop.permute.xlu1 %1520  ;;  %v1519_v29 = vpop.permute.xlu0 %1518 }
 0x303   : > { %2369 = vst.msk [vmem:[%s2858_s22 + $0x988] sm:$0xff] %vm2062_vm0, %v1521_v28  ;;  %2368 = vst.msk [vmem:[%s2858_s22 + $0x980] sm:$0xff] %vm2062_vm0, %v1519_v29 }
 0x304   : > { %1636 = vrot.lane.b32.xlu1 %v505_v26, %s2642_s19  ;;  %1634 = vrot.lane.b32.xlu0 %v504_v27, %s2642_s19 }
 0x306   : > { %v1525_v32 = vpop.permute.xlu1 %1524  ;;  %v1523_v33 = vpop.permute.xlu0 %1522 }
 0x307   : > { %2371 = vst.msk [vmem:[%s2858_s22 + $0x998] sm:$0xff] %vm2062_vm0, %v1525_v32  ;;  %2370 = vst.msk [vmem:[%s2858_s22 + $0x990] sm:$0xff] %vm2062_vm0, %v1523_v33 }
 0x308   : > { %1640 = vrot.lane.b32.xlu1 %v507_v30, %s2642_s19  ;;  %1638 = vrot.lane.b32.xlu0 %v506_v31, %s2642_s19 }
 0x30a   : > { %v1529_v36 = vpop.permute.xlu1 %1528  ;;  %v1527_v37 = vpop.permute.xlu0 %1526 }
 0x30b   : > { %2373 = vst.msk [vmem:[%s2858_s22 + $0x9a8] sm:$0xff] %vm2062_vm0, %v1529_v36  ;;  %2372 = vst.msk [vmem:[%s2858_s22 + $0x9a0] sm:$0xff] %vm2062_vm0, %v1527_v37 }
 0x30c   : > { %1644 = vrot.lane.b32.xlu1 %v509_v34, %s2642_s19  ;;  %1642 = vrot.lane.b32.xlu0 %v508_v35, %s2642_s19 }
 0x30e   : > { %v1533_v40 = vpop.permute.xlu1 %1532  ;;  %v1531_v41 = vpop.permute.xlu0 %1530 }
 0x30f   : > { %2375 = vst.msk [vmem:[%s2858_s22 + $0x9b8] sm:$0xf] %vm2074_vm1, %v1533_v40 }
 0x310   : > { %2374 = vst.msk [vmem:[%s2858_s22 + $0x9b0] sm:$0xff] %vm2062_vm0, %v1531_v41  ;;  %1648 = vrot.lane.b32.xlu1 %v511_v38, %s2642_s19  ;;  %1646 = vrot.lane.b32.xlu0 %v510_v39, %s2642_s19 }
 0x312   : > { %v1537_v44 = vpop.permute.xlu1 %1536  ;;  %v1535_v45 = vpop.permute.xlu0 %1534 }
 0x313   : > { %2377 = vst.msk [vmem:[%s2858_s22 + $0x9c8] sm:$0xff] %vm2062_vm0, %v1537_v44  ;;  %2376 = vst.msk [vmem:[%s2858_s22 + $0x9c0] sm:$0xff] %vm2062_vm0, %v1535_v45 }
 0x314   : > { %1652 = vrot.lane.b32.xlu1 %v513_v42, %s2642_s19  ;;  %1650 = vrot.lane.b32.xlu0 %v512_v43, %s2642_s19 }
 0x316   : > { %v1541_v48 = vpop.permute.xlu1 %1540  ;;  %v1539_v49 = vpop.permute.xlu0 %1538 }
 0x317   : > { %2379 = vst.msk [vmem:[%s2858_s22 + $0x9d8] sm:$0xff] %vm2062_vm0, %v1541_v48  ;;  %2378 = vst.msk [vmem:[%s2858_s22 + $0x9d0] sm:$0xff] %vm2062_vm0, %v1539_v49 }
 0x318   : > { %1656 = vrot.lane.b32.xlu1 %v515_v46, %s2642_s19  ;;  %1654 = vrot.lane.b32.xlu0 %v514_v47, %s2642_s19 }
 0x31a   : > { %v1545_v52 = vpop.permute.xlu1 %1544  ;;  %v1543_v53 = vpop.permute.xlu0 %1542 }
 0x31b   : > { %2381 = vst.msk [vmem:[%s2858_s22 + $0x9e8] sm:$0xff] %vm2062_vm0, %v1545_v52  ;;  %2380 = vst.msk [vmem:[%s2858_s22 + $0x9e0] sm:$0xff] %vm2062_vm0, %v1543_v53 }
 0x31c   : > { %1660 = vrot.lane.b32.xlu1 %v517_v50, %s2642_s19  ;;  %1658 = vrot.lane.b32.xlu0 %v516_v51, %s2642_s19 }
 0x31e   : > { %v1549_v56 = vpop.permute.xlu1 %1548  ;;  %v1547_v57 = vpop.permute.xlu0 %1546 }
 0x31f   : > { %2383 = vst.msk [vmem:[%s2858_s22 + $0x9f8] sm:$0xff] %vm2062_vm0, %v1549_v56  ;;  %2382 = vst.msk [vmem:[%s2858_s22 + $0x9f0] sm:$0xff] %vm2062_vm0, %v1547_v57 }
 0x320   : > { %1664 = vrot.lane.b32.xlu1 %v519_v54, %s2642_s19  ;;  %1662 = vrot.lane.b32.xlu0 %v518_v55, %s2642_s19 }
 0x322   : > { %v1553_v60 = vpop.permute.xlu1 %1552  ;;  %v1551_v61 = vpop.permute.xlu0 %1550 }
 0x323   : > { %2385 = vst.msk [vmem:[%s2858_s22 + $0xa08] sm:$0xff] %vm2062_vm0, %v1553_v60  ;;  %2384 = vst.msk [vmem:[%s2858_s22 + $0xa00] sm:$0xff] %vm2062_vm0, %v1551_v61 }
 0x324   : > { %1668 = vrot.lane.b32.xlu1 %v521_v58, %s2642_s19  ;;  %1666 = vrot.lane.b32.xlu0 %v520_v59, %s2642_s19 }
 0x326   : > { %v1557_v0 = vpop.permute.xlu1 %1556  ;;  %v1555_v1 = vpop.permute.xlu0 %1554 }
 0x327   : > { %2387 = vst.msk [vmem:[%s2858_s22 + $0xa18] sm:$0xf] %vm2074_vm1, %v1557_v0 }
 0x328   : > { %2386 = vst.msk [vmem:[%s2858_s22 + $0xa10] sm:$0xff] %vm2062_vm0, %v1555_v1  ;;  %1672 = vrot.lane.b32.xlu1 %v523_v62, %s2642_s19  ;;  %1670 = vrot.lane.b32.xlu0 %v522_v63, %s2642_s19 }
 0x32a   : > { %v1561_v4 = vpop.permute.xlu1 %1560  ;;  %v1559_v5 = vpop.permute.xlu0 %1558 }
 0x32b   : > { %2389 = vst.msk [vmem:[%s2858_s22 + $0xa28] sm:$0xff] %vm2062_vm0, %v1561_v4  ;;  %2388 = vst.msk [vmem:[%s2858_s22 + $0xa20] sm:$0xff] %vm2062_vm0, %v1559_v5 }
 0x32c   : > { %1676 = vrot.lane.b32.xlu1 %v525_v2, %s2642_s19  ;;  %1674 = vrot.lane.b32.xlu0 %v524_v3, %s2642_s19 }
 0x32e   : > { %v1565_v6 = vpop.permute.xlu1 %1564  ;;  %v1563_v7 = vpop.permute.xlu0 %1562 }
 0x32f   : > { %2391 = vst.msk [vmem:[%s2858_s22 + $0xa38] sm:$0xff] %vm2062_vm0, %v1565_v6  ;;  %2390 = vst.msk [vmem:[%s2858_s22 + $0xa30] sm:$0xff] %vm2062_vm0, %v1563_v7 }
 0x332   : > { %v1569_v8 = vpop.permute.xlu1 %1568  ;;  %v1567_v9 = vpop.permute.xlu0 %1566 }
 0x333   : > { %2393 = vst.msk [vmem:[%s2858_s22 + $0xa48] sm:$0xff] %vm2062_vm0, %v1569_v8  ;;  %2392 = vst.msk [vmem:[%s2858_s22 + $0xa40] sm:$0xff] %vm2062_vm0, %v1567_v9 }
 0x336   : > { %v1573_v10 = vpop.permute.xlu1 %1572  ;;  %v1571_v11 = vpop.permute.xlu0 %1570 }
 0x337   : > { %2395 = vst.msk [vmem:[%s2858_s22 + $0xa58] sm:$0xff] %vm2062_vm0, %v1573_v10  ;;  %2394 = vst.msk [vmem:[%s2858_s22 + $0xa50] sm:$0xff] %vm2062_vm0, %v1571_v11 }
 0x33a   : > { %v1577_v12 = vpop.permute.xlu1 %1576  ;;  %v1575_v13 = vpop.permute.xlu0 %1574 }
 0x33b   : > { %2397 = vst.msk [vmem:[%s2858_s22 + $0xa68] sm:$0xff] %vm2062_vm0, %v1577_v12  ;;  %2396 = vst.msk [vmem:[%s2858_s22 + $0xa60] sm:$0xff] %vm2062_vm0, %v1575_v13 }
 0x33e   : > { %v1581_v14 = vpop.permute.xlu1 %1580  ;;  %v1579_v15 = vpop.permute.xlu0 %1578 }
 0x33f   : > { %2399 = vst.msk [vmem:[%s2858_s22 + $0xa78] sm:$0xf] %vm2074_vm1, %v1581_v14 }
 0x340   : > { %2398 = vst.msk [vmem:[%s2858_s22 + $0xa70] sm:$0xff] %vm2062_vm0, %v1579_v15 }
 0x342   : > { %v1585_v16 = vpop.permute.xlu1 %1584  ;;  %v1583_v17 = vpop.permute.xlu0 %1582 }
 0x343   : > { %2401 = vst.msk [vmem:[%s2858_s22 + $0xa88] sm:$0xff] %vm2062_vm0, %v1585_v16  ;;  %2400 = vst.msk [vmem:[%s2858_s22 + $0xa80] sm:$0xff] %vm2062_vm0, %v1583_v17 }
 0x346   : > { %v1589_v18 = vpop.permute.xlu1 %1588  ;;  %v1587_v19 = vpop.permute.xlu0 %1586 }
 0x347   : > { %2403 = vst.msk [vmem:[%s2858_s22 + $0xa98] sm:$0xff] %vm2062_vm0, %v1589_v18  ;;  %2402 = vst.msk [vmem:[%s2858_s22 + $0xa90] sm:$0xff] %vm2062_vm0, %v1587_v19 }
 0x34a   : > { %v1593_v20 = vpop.permute.xlu1 %1592  ;;  %v1591_v21 = vpop.permute.xlu0 %1590 }
 0x34b   : > { %2405 = vst.msk [vmem:[%s2858_s22 + $0xaa8] sm:$0xff] %vm2062_vm0, %v1593_v20  ;;  %2404 = vst.msk [vmem:[%s2858_s22 + $0xaa0] sm:$0xff] %vm2062_vm0, %v1591_v21 }
 0x34e   : > { %v1597_v22 = vpop.permute.xlu1 %1596  ;;  %v1595_v23 = vpop.permute.xlu0 %1594 }
 0x34f   : > { %2407 = vst.msk [vmem:[%s2858_s22 + $0xab8] sm:$0xff] %vm2062_vm0, %v1597_v22  ;;  %2406 = vst.msk [vmem:[%s2858_s22 + $0xab0] sm:$0xff] %vm2062_vm0, %v1595_v23 }
 0x352   : > { %v1601_v24 = vpop.permute.xlu1 %1600  ;;  %v1599_v25 = vpop.permute.xlu0 %1598 }
 0x353   : > { %2409 = vst.msk [vmem:[%s2858_s22 + $0xac8] sm:$0xff] %vm2062_vm0, %v1601_v24  ;;  %2408 = vst.msk [vmem:[%s2858_s22 + $0xac0] sm:$0xff] %vm2062_vm0, %v1599_v25 }
 0x356   : > { %v1605_v26 = vpop.permute.xlu1 %1604  ;;  %v1603_v27 = vpop.permute.xlu0 %1602 }
 0x357   : > { %2411 = vst.msk [vmem:[%s2858_s22 + $0xad8] sm:$0xf] %vm2074_vm1, %v1605_v26 }
 0x358   : > { %2410 = vst.msk [vmem:[%s2858_s22 + $0xad0] sm:$0xff] %vm2062_vm0, %v1603_v27 }
 0x35a   : > { %v1609_v28 = vpop.permute.xlu1 %1608  ;;  %v1607_v29 = vpop.permute.xlu0 %1606 }
 0x35b   : > { %2413 = vst.msk [vmem:[%s2858_s22 + $0xae8] sm:$0xff] %vm2062_vm0, %v1609_v28  ;;  %2412 = vst.msk [vmem:[%s2858_s22 + $0xae0] sm:$0xff] %vm2062_vm0, %v1607_v29 }
 0x35e   : > { %v1613_v30 = vpop.permute.xlu1 %1612  ;;  %v1611_v31 = vpop.permute.xlu0 %1610 }
 0x35f   : > { %2415 = vst.msk [vmem:[%s2858_s22 + $0xaf8] sm:$0xff] %vm2062_vm0, %v1613_v30  ;;  %2414 = vst.msk [vmem:[%s2858_s22 + $0xaf0] sm:$0xff] %vm2062_vm0, %v1611_v31 }
 0x362   : > { %v1617_v32 = vpop.permute.xlu1 %1616  ;;  %v1615_v33 = vpop.permute.xlu0 %1614 }
 0x363   : > { %2417 = vst.msk [vmem:[%s2858_s22 + $0xb08] sm:$0xff] %vm2062_vm0, %v1617_v32  ;;  %2416 = vst.msk [vmem:[%s2858_s22 + $0xb00] sm:$0xff] %vm2062_vm0, %v1615_v33 }
 0x366   : > { %v1621_v34 = vpop.permute.xlu1 %1620  ;;  %v1619_v35 = vpop.permute.xlu0 %1618 }
 0x367   : > { %2419 = vst.msk [vmem:[%s2858_s22 + $0xb18] sm:$0xff] %vm2062_vm0, %v1621_v34  ;;  %2418 = vst.msk [vmem:[%s2858_s22 + $0xb10] sm:$0xff] %vm2062_vm0, %v1619_v35 }
 0x36a   : > { %v1625_v36 = vpop.permute.xlu1 %1624  ;;  %v1623_v37 = vpop.permute.xlu0 %1622 }
 0x36b   : > { %2421 = vst.msk [vmem:[%s2858_s22 + $0xb28] sm:$0xff] %vm2062_vm0, %v1625_v36  ;;  %2420 = vst.msk [vmem:[%s2858_s22 + $0xb20] sm:$0xff] %vm2062_vm0, %v1623_v37 }
 0x36e   : > { %v1629_v38 = vpop.permute.xlu1 %1628  ;;  %v1627_v39 = vpop.permute.xlu0 %1626 }
 0x36f   : > { %2423 = vst.msk [vmem:[%s2858_s22 + $0xb38] sm:$0xf] %vm2074_vm1, %v1629_v38 }
 0x370   : > { %2422 = vst.msk [vmem:[%s2858_s22 + $0xb30] sm:$0xff] %vm2062_vm0, %v1627_v39 }
 0x372   : > { %v1633_v40 = vpop.permute.xlu1 %1632  ;;  %v1631_v41 = vpop.permute.xlu0 %1630 }
 0x373   : > { %2425 = vst.msk [vmem:[%s2858_s22 + $0xb48] sm:$0xff] %vm2062_vm0, %v1633_v40  ;;  %2424 = vst.msk [vmem:[%s2858_s22 + $0xb40] sm:$0xff] %vm2062_vm0, %v1631_v41 }
 0x376   : > { %v1637_v42 = vpop.permute.xlu1 %1636  ;;  %v1635_v43 = vpop.permute.xlu0 %1634 }
 0x377   : > { %2427 = vst.msk [vmem:[%s2858_s22 + $0xb58] sm:$0xff] %vm2062_vm0, %v1637_v42  ;;  %2426 = vst.msk [vmem:[%s2858_s22 + $0xb50] sm:$0xff] %vm2062_vm0, %v1635_v43 }
 0x37a   : > { %v1641_v44 = vpop.permute.xlu1 %1640  ;;  %v1639_v45 = vpop.permute.xlu0 %1638 }
 0x37b   : > { %2429 = vst.msk [vmem:[%s2858_s22 + $0xb68] sm:$0xff] %vm2062_vm0, %v1641_v44  ;;  %2428 = vst.msk [vmem:[%s2858_s22 + $0xb60] sm:$0xff] %vm2062_vm0, %v1639_v45 }
 0x37e   : > { %v1645_v46 = vpop.permute.xlu1 %1644  ;;  %v1643_v47 = vpop.permute.xlu0 %1642 }
 0x37f   : > { %2431 = vst.msk [vmem:[%s2858_s22 + $0xb78] sm:$0xff] %vm2062_vm0, %v1645_v46  ;;  %2430 = vst.msk [vmem:[%s2858_s22 + $0xb70] sm:$0xff] %vm2062_vm0, %v1643_v47 }
 0x382   : > { %v1649_v48 = vpop.permute.xlu1 %1648  ;;  %v1647_v49 = vpop.permute.xlu0 %1646 }
 0x383   : > { %2433 = vst.msk [vmem:[%s2858_s22 + $0xb88] sm:$0xff] %vm2062_vm0, %v1649_v48  ;;  %2432 = vst.msk [vmem:[%s2858_s22 + $0xb80] sm:$0xff] %vm2062_vm0, %v1647_v49 }
 0x386   : > { %v1653_v50 = vpop.permute.xlu1 %1652  ;;  %v1651_v51 = vpop.permute.xlu0 %1650 }
 0x387   : > { %2435 = vst.msk [vmem:[%s2858_s22 + $0xb98] sm:$0xf] %vm2074_vm1, %v1653_v50 }
 0x388   : > { %2434 = vst.msk [vmem:[%s2858_s22 + $0xb90] sm:$0xff] %vm2062_vm0, %v1651_v51 }
 0x38a   : > { %v1657_v52 = vpop.permute.xlu1 %1656  ;;  %v1655_v53 = vpop.permute.xlu0 %1654 }
 0x38b   : > { %2437 = vst.msk [vmem:[%s2858_s22 + $0xba8] sm:$0xff] %vm2062_vm0, %v1657_v52  ;;  %2436 = vst.msk [vmem:[%s2858_s22 + $0xba0] sm:$0xff] %vm2062_vm0, %v1655_v53 }
 0x38e   : > { %v1661_v54 = vpop.permute.xlu1 %1660  ;;  %v1659_v55 = vpop.permute.xlu0 %1658 }
 0x38f   : > { %2439 = vst.msk [vmem:[%s2858_s22 + $0xbb8] sm:$0xff] %vm2062_vm0, %v1661_v54  ;;  %2438 = vst.msk [vmem:[%s2858_s22 + $0xbb0] sm:$0xff] %vm2062_vm0, %v1659_v55 }
 0x392   : > { %v1665_v56 = vpop.permute.xlu1 %1664  ;;  %v1663_v57 = vpop.permute.xlu0 %1662 }
 0x393   : > { %2441 = vst.msk [vmem:[%s2858_s22 + $0xbc8] sm:$0xff] %vm2062_vm0, %v1665_v56  ;;  %2440 = vst.msk [vmem:[%s2858_s22 + $0xbc0] sm:$0xff] %vm2062_vm0, %v1663_v57 }
 0x396   : > { %v1669_v58 = vpop.permute.xlu1 %1668  ;;  %v1667_v59 = vpop.permute.xlu0 %1666 }
 0x397   : > { %2443 = vst.msk [vmem:[%s2858_s22 + $0xbd8] sm:$0xff] %vm2062_vm0, %v1669_v58  ;;  %2442 = vst.msk [vmem:[%s2858_s22 + $0xbd0] sm:$0xff] %vm2062_vm0, %v1667_v59 }
 0x39a   : > { %v1673_v60 = vpop.permute.xlu1 %1672  ;;  %v1671_v61 = vpop.permute.xlu0 %1670 }
 0x39b   : > { %2445 = vst.msk [vmem:[%s2858_s22 + $0xbe8] sm:$0xff] %vm2062_vm0, %v1673_v60  ;;  %2444 = vst.msk [vmem:[%s2858_s22 + $0xbe0] sm:$0xff] %vm2062_vm0, %v1671_v61 }
 0x39e   : > { %v1677_v62 = vpop.permute.xlu1 %1676  ;;  %v1675_v63 = vpop.permute.xlu0 %1674 }
 0x39f   : > { %2447 = vst.msk [vmem:[%s2858_s22 + $0xbf8] sm:$0xf] %vm2074_vm1, %v1677_v62 }
 0x3a0   : > { %2446 = vst.msk [vmem:[%s2858_s22 + $0xbf0] sm:$0xff] %vm2062_vm0, %v1675_v63 }
 0x3a1 PF: > { %p11_p9 = scmp.ge.s32.totalorder %s2673_s11, 4   ;;  %s4300_s6 = smov %s2629_s7 }
 0x3a2   : > { %s4301_s7 = smov %s2633_s8  ;;  %s4302_s8 = smov %s2683_s14 }
 0x3a3   : > { %s4303_s9 = smov %s2673_s11  ;;  %13 = sbr.rel (!%p11_p9) target bundleno = 3 (0x3), region = 64 }
 0x3a8   :  { %2472 = vsyncpa [#allocation3], 1 }
 0x3a9   :  { %2474 = vsyncpa [#allocation3 + $0x1], 1 }

</bundles_post_ra>
